<compile_context>
chip_gen: v7x
topology: tpu7x:2x2x1
jax: 0.10.0
libtpu: 0.0.40
codegen_flags: <defaults>
</compile_context>

<pallas_src>
import functools

import jax
import jax.numpy as jnp
import numpy as np
from jax.experimental import pallas as pl
from jax.experimental.pallas import tpu as pltpu


TILE_B = 8        # batch rows per grid step (raise to >=128 for real serving)
NCLS = 2          # real number of classes
NCLS_PAD = 128    # lane-dense padded classifier width


def _head_kernel(ids_ref, mask_ref, emb_ref, wp_ref, bp_ref, wc_ref, bc_ref,
                 out_ref):
    # ids_ref : [TB, S]        int32 token ids (padded rows have mask == 0)
    # mask_ref: [TB, S]        f32 attention mask
    # emb_ref : [VOCAB, H]     f32 embedding table (VMEM-resident)
    # wp_ref  : [H, H]         bf16 pooler dense weight
    # bp_ref  : [1, H]         f32 pooler dense bias
    # wc_ref  : [H, NCLS_PAD]  f32 classifier weight (zero-padded past col 2)
    # bc_ref  : [1, NCLS_PAD]  f32 classifier bias  (zero-padded past col 2)
    # out_ref : [TB, NCLS_PAD] f32 probabilities in lanes 0..1, zeros elsewhere
    tb, seq = ids_ref.shape
    vocab = emb_ref.shape[0]

    ids = ids_ref[...]                                            # [TB, S]
    m = mask_ref[...]                                             # [TB, S]

    # Fold the mean-pool normalization into the mask weights.
    denom = jnp.maximum(jnp.sum(m, axis=1, keepdims=True), 1.0)   # [TB, 1]
    w = m / denom                                                 # [TB, S]

    # Masked mean pool == (normalized one-hot counts) @ emb_table.
    lane_v = jax.lax.broadcasted_iota(jnp.int32, (tb, vocab), 1)  # [TB, VOCAB]
    counts = jnp.zeros((tb, vocab), jnp.float32)
    for s in range(seq):                                          # S is small/static
        hit = (ids[:, s:s + 1] == lane_v).astype(jnp.float32)     # [TB, VOCAB]
        counts = counts + hit * w[:, s:s + 1]

    pooled = jnp.dot(counts, emb_ref[...],
                     preferred_element_type=jnp.float32)          # [TB, H] f32

    # Pooler dense + tanh -> stand-in "bert_output" (bf16 MXU operands,
    # f32 accumulate, f32 tanh).
    text = jnp.tanh(
        jnp.dot(pooled.astype(jnp.bfloat16), wp_ref[...],
                preferred_element_type=jnp.float32)
        + bp_ref[...])                                            # [TB, H] f32

    # Classifier: Linear(H -> 2), zero-padded to a lane-dense 128-wide tile.
    act = jnp.maximum(
        jnp.dot(text, wc_ref[...], preferred_element_type=jnp.float32)
        + bc_ref[...],
        0.0)                                                      # [TB, 128]

    # 2-class softmax over the first two lanes, done as a sigmoid
    # (no cross-lane reductions over an almost-empty vreg).
    a0 = act[:, 0:1]
    a1 = act[:, 1:2]
    p0 = 1.0 / (1.0 + jnp.exp(a1 - a0))                           # [TB, 1]
    p1 = 1.0 - p0

    lane_c = jax.lax.broadcasted_iota(jnp.int32, out_ref.shape, 1)
    out_ref[...] = jnp.where(lane_c == 0, p0,
                             jnp.where(lane_c == 1, p1, 0.0))


def text_classifier_forward(input_id, mask, params):
    B, S = input_id.shape
    VOCAB, H = params["emb_table"].shape

    # Pad batch to a multiple of TILE_B (f32 sublane-friendly, grid-tileable).
    b_pad = ((B + TILE_B - 1) // TILE_B) * TILE_B
    pad = b_pad - B
    ids_p = jnp.pad(input_id.astype(jnp.int32), ((0, pad), (0, 0)))
    mask_p = jnp.pad(mask.astype(jnp.float32), ((0, pad), (0, 0)))

    # bf16 copy of the dominant weight (halves HBM->VMEM bytes, native MXU path).
    w_pool_bf = params["w_pool"].astype(jnp.bfloat16)
    # Zero-pad the classifier to a lane-dense 128-wide output tile.
    w_cls_p = jnp.pad(params["w_cls"], ((0, 0), (0, NCLS_PAD - NCLS)))
    b_cls_p = jnp.pad(params["b_cls"], ((0, 0), (0, NCLS_PAD - NCLS)))

    grid = (b_pad // TILE_B,)

    out = pl.pallas_call(
        _head_kernel,
        out_shape=jax.ShapeDtypeStruct((b_pad, NCLS_PAD), jnp.float32),
        grid=grid,
        in_specs=[
            pl.BlockSpec((TILE_B, S), lambda i: (i, 0)),        # ids
            pl.BlockSpec((TILE_B, S), lambda i: (i, 0)),        # mask
            pl.BlockSpec((VOCAB, H), lambda i: (0, 0)),         # emb table (resident)
            pl.BlockSpec((H, H), lambda i: (0, 0)),             # w_pool bf16 (resident)
            pl.BlockSpec((1, H), lambda i: (0, 0)),             # b_pool
            pl.BlockSpec((H, NCLS_PAD), lambda i: (0, 0)),      # w_cls padded
            pl.BlockSpec((1, NCLS_PAD), lambda i: (0, 0)),      # b_cls padded
        ],
        out_specs=pl.BlockSpec((TILE_B, NCLS_PAD), lambda i: (i, 0)),
        compiler_params=pltpu.CompilerParams(
            dimension_semantics=("parallel",)),
    )(ids_p, mask_p, params["emb_table"], w_pool_bf, params["b_pool"],
      w_cls_p, b_cls_p)

    return out[:B, :NCLS]


forward = jax.jit(text_classifier_forward)


def _reference_forward(input_id, mask, params):
    tok = params["emb_table"][input_id].astype(jnp.float32)        # [B, S, H]
    m = mask.astype(jnp.float32)
    pooled = jnp.sum(tok * m[:, :, None], axis=1) / jnp.maximum(
        jnp.sum(m, axis=1, keepdims=True), 1.0)
    text = jnp.tanh(pooled @ params["w_pool"] + params["b_pool"])
    logits = text @ params["w_cls"] + params["b_cls"]
    act = jnp.maximum(logits, 0.0)
    return jax.nn.softmax(act, axis=1)


def init_params(key, vocab=128, bert_emb_size=768):
    k0, k1, k2 = jax.random.split(key, 3)
    scale = 0.02
    return {
        "emb_table": scale * jax.random.normal(
            k0, (vocab, bert_emb_size), jnp.float32),
        "w_pool": scale * jax.random.normal(
            k1, (bert_emb_size, bert_emb_size), jnp.float32),
        "b_pool": jnp.zeros((1, bert_emb_size), jnp.float32),
        "w_cls": scale * jax.random.normal(
            k2, (bert_emb_size, NCLS), jnp.float32),
        "b_cls": jnp.zeros((1, NCLS), jnp.float32),
    }


if __name__ == "__main__":
    B, S = 2, 8
    VOCAB, H = 128, 768

    key = jax.random.PRNGKey(0)
    k_param, k_ids, k_ids2, k_len2 = jax.random.split(key, 4)

    params = init_params(k_param, vocab=VOCAB, bert_emb_size=H)

    input_id = jax.random.randint(k_ids, (B, S), 0, VOCAB, dtype=jnp.int32)
    mask = jnp.array([[1, 1, 1, 1, 1, 1, 0, 0],
                      [1, 1, 1, 1, 0, 0, 0, 0]], dtype=jnp.int32)

    out = jax.block_until_ready(forward(input_id, mask, params))
    ref = _reference_forward(input_id, mask, params)
    np.testing.assert_allclose(np.asarray(out), np.asarray(ref),
                               rtol=2e-3, atol=2e-4)
    assert out.shape == (B, NCLS)
    np.testing.assert_allclose(np.asarray(out).sum(axis=1),
                               np.ones(B), rtol=1e-5)

    # Second check: multi-tile batch grid (2 blocks -> exercises pipelining
    # and the parallel axis / megacore path).
    B2 = 16
    ids2 = jax.random.randint(k_ids2, (B2, S), 0, VOCAB, dtype=jnp.int32)
    lens2 = jax.random.randint(k_len2, (B2, 1), 1, S + 1, dtype=jnp.int32)
    mask2 = (jnp.arange(S, dtype=jnp.int32)[None, :] < lens2).astype(jnp.int32)
    out2 = jax.block_until_ready(forward(ids2, mask2, params))
    ref2 = _reference_forward(ids2, mask2, params)
    np.testing.assert_allclose(np.asarray(out2), np.asarray(ref2),
                               rtol=2e-3, atol=2e-4)

    print("KERNEL_OK")
</pallas_src>

<mosaic_0001>
module attributes {stable_mosaic.version = 11 : i64} {
  func.func @_head_kernel(%arg0: i32, %arg1: memref<8x8xi32, #tpu.memory_space<vmem>>, %arg2: memref<8x8xf32, #tpu.memory_space<vmem>>, %arg3: memref<128x768xf32, #tpu.memory_space<vmem>>, %arg4: memref<768x768xbf16, #tpu.memory_space<vmem>>, %arg5: memref<1x768xf32, #tpu.memory_space<vmem>>, %arg6: memref<768x128xf32, #tpu.memory_space<vmem>>, %arg7: memref<1x128xf32, #tpu.memory_space<vmem>>, %arg8: memref<8x128xf32, #tpu.memory_space<vmem>>) attributes {dimension_semantics = [#tpu.dimension_semantics<parallel>], iteration_bounds = array<i64: 1>, scalar_prefetch = 0 : i64, scratch_operands = 0 : i64, tpu.core_type = #tpu.core_type<tc>, window_params = [{transform_indices = @transform_0, window_bounds = array<i64: 8, 8>}, {transform_indices = @transform_1, window_bounds = array<i64: 8, 8>}, {pipeline_mode = #tpu.pipeline_mode<synchronous>, transform_indices = @transform_2, window_bounds = array<i64: 128, 768>}, {pipeline_mode = #tpu.pipeline_mode<synchronous>, transform_indices = @transform_3, window_bounds = array<i64: 768, 768>}, {pipeline_mode = #tpu.pipeline_mode<synchronous>, transform_indices = @transform_4, window_bounds = array<i64: 1, 768>}, {pipeline_mode = #tpu.pipeline_mode<synchronous>, transform_indices = @transform_5, window_bounds = array<i64: 768, 128>}, {pipeline_mode = #tpu.pipeline_mode<synchronous>, transform_indices = @transform_6, window_bounds = array<i64: 1, 128>}, {transform_indices = @transform_7, window_bounds = array<i64: 8, 128>}]} {
    %c0 = arith.constant 0 : index
    %c0_0 = arith.constant 0 : index
    %0 = vector.load %arg1[%c0, %c0_0] : memref<8x8xi32, #tpu.memory_space<vmem>>, vector<8x8xi32>
    %c0_1 = arith.constant 0 : index
    %c0_2 = arith.constant 0 : index
    %1 = vector.load %arg2[%c0_1, %c0_2] : memref<8x8xf32, #tpu.memory_space<vmem>>, vector<8x8xf32>
    %cst = arith.constant dense<0.000000e+00> : vector<8xf32>
    %2 = vector.multi_reduction <add>, %1, %cst [1] : vector<8x8xf32> to vector<8xf32>
    %3 = vector.shape_cast %2 : vector<8xf32> to vector<8x1xf32>
    %cst_3 = arith.constant 1.000000e+00 : f32
    %4 = vector.broadcast %cst_3 : f32 to vector<8x1xf32>
    %5 = arith.maximumf %3, %4 : vector<8x1xf32>
    %6 = vector.broadcast %5 : vector<8x1xf32> to vector<8x8xf32>
    %7 = arith.divf %1, %6 : vector<8x8xf32>
    %8 = tpu.iota {dimensions = array<i32: 1>} : vector<8x128xi32>
    %cst_4 = arith.constant 0.000000e+00 : f32
    %9 = vector.broadcast %cst_4 : f32 to vector<8x128xf32>
    %10 = vector.extract_strided_slice %0 {offsets = [0, 0], sizes = [8, 1], strides = [1, 1]} : vector<8x8xi32> to vector<8x1xi32>
    %11 = vector.broadcast %10 : vector<8x1xi32> to vector<8x128xi32>
    %12 = arith.cmpi eq, %11, %8 : vector<8x128xi32>
    %13 = arith.extui %12 : vector<8x128xi1> to vector<8x128xi32>
    %14 = arith.sitofp %13 : vector<8x128xi32> to vector<8x128xf32>
    %15 = vector.extract_strided_slice %7 {offsets = [0, 0], sizes = [8, 1], strides = [1, 1]} : vector<8x8xf32> to vector<8x1xf32>
    %16 = vector.broadcast %15 : vector<8x1xf32> to vector<8x128xf32>
    %17 = arith.mulf %14, %16 : vector<8x128xf32>
    %18 = arith.addf %9, %17 : vector<8x128xf32>
    %19 = vector.extract_strided_slice %0 {offsets = [0, 1], sizes = [8, 1], strides = [1, 1]} : vector<8x8xi32> to vector<8x1xi32>
    %20 = vector.broadcast %19 : vector<8x1xi32> to vector<8x128xi32>
    %21 = arith.cmpi eq, %20, %8 : vector<8x128xi32>
    %22 = arith.extui %21 : vector<8x128xi1> to vector<8x128xi32>
    %23 = arith.sitofp %22 : vector<8x128xi32> to vector<8x128xf32>
    %24 = vector.extract_strided_slice %7 {offsets = [0, 1], sizes = [8, 1], strides = [1, 1]} : vector<8x8xf32> to vector<8x1xf32>
    %25 = vector.broadcast %24 : vector<8x1xf32> to vector<8x128xf32>
    %26 = arith.mulf %23, %25 : vector<8x128xf32>
    %27 = arith.addf %18, %26 : vector<8x128xf32>
    %28 = vector.extract_strided_slice %0 {offsets = [0, 2], sizes = [8, 1], strides = [1, 1]} : vector<8x8xi32> to vector<8x1xi32>
    %29 = vector.broadcast %28 : vector<8x1xi32> to vector<8x128xi32>
    %30 = arith.cmpi eq, %29, %8 : vector<8x128xi32>
    %31 = arith.extui %30 : vector<8x128xi1> to vector<8x128xi32>
    %32 = arith.sitofp %31 : vector<8x128xi32> to vector<8x128xf32>
    %33 = vector.extract_strided_slice %7 {offsets = [0, 2], sizes = [8, 1], strides = [1, 1]} : vector<8x8xf32> to vector<8x1xf32>
    %34 = vector.broadcast %33 : vector<8x1xf32> to vector<8x128xf32>
    %35 = arith.mulf %32, %34 : vector<8x128xf32>
    %36 = arith.addf %27, %35 : vector<8x128xf32>
    %37 = vector.extract_strided_slice %0 {offsets = [0, 3], sizes = [8, 1], strides = [1, 1]} : vector<8x8xi32> to vector<8x1xi32>
    %38 = vector.broadcast %37 : vector<8x1xi32> to vector<8x128xi32>
    %39 = arith.cmpi eq, %38, %8 : vector<8x128xi32>
    %40 = arith.extui %39 : vector<8x128xi1> to vector<8x128xi32>
    %41 = arith.sitofp %40 : vector<8x128xi32> to vector<8x128xf32>
    %42 = vector.extract_strided_slice %7 {offsets = [0, 3], sizes = [8, 1], strides = [1, 1]} : vector<8x8xf32> to vector<8x1xf32>
    %43 = vector.broadcast %42 : vector<8x1xf32> to vector<8x128xf32>
    %44 = arith.mulf %41, %43 : vector<8x128xf32>
    %45 = arith.addf %36, %44 : vector<8x128xf32>
    %46 = vector.extract_strided_slice %0 {offsets = [0, 4], sizes = [8, 1], strides = [1, 1]} : vector<8x8xi32> to vector<8x1xi32>
    %47 = vector.broadcast %46 : vector<8x1xi32> to vector<8x128xi32>
    %48 = arith.cmpi eq, %47, %8 : vector<8x128xi32>
    %49 = arith.extui %48 : vector<8x128xi1> to vector<8x128xi32>
    %50 = arith.sitofp %49 : vector<8x128xi32> to vector<8x128xf32>
    %51 = vector.extract_strided_slice %7 {offsets = [0, 4], sizes = [8, 1], strides = [1, 1]} : vector<8x8xf32> to vector<8x1xf32>
    %52 = vector.broadcast %51 : vector<8x1xf32> to vector<8x128xf32>
    %53 = arith.mulf %50, %52 : vector<8x128xf32>
    %54 = arith.addf %45, %53 : vector<8x128xf32>
    %55 = vector.extract_strided_slice %0 {offsets = [0, 5], sizes = [8, 1], strides = [1, 1]} : vector<8x8xi32> to vector<8x1xi32>
    %56 = vector.broadcast %55 : vector<8x1xi32> to vector<8x128xi32>
    %57 = arith.cmpi eq, %56, %8 : vector<8x128xi32>
    %58 = arith.extui %57 : vector<8x128xi1> to vector<8x128xi32>
    %59 = arith.sitofp %58 : vector<8x128xi32> to vector<8x128xf32>
    %60 = vector.extract_strided_slice %7 {offsets = [0, 5], sizes = [8, 1], strides = [1, 1]} : vector<8x8xf32> to vector<8x1xf32>
    %61 = vector.broadcast %60 : vector<8x1xf32> to vector<8x128xf32>
    %62 = arith.mulf %59, %61 : vector<8x128xf32>
    %63 = arith.addf %54, %62 : vector<8x128xf32>
    %64 = vector.extract_strided_slice %0 {offsets = [0, 6], sizes = [8, 1], strides = [1, 1]} : vector<8x8xi32> to vector<8x1xi32>
    %65 = vector.broadcast %64 : vector<8x1xi32> to vector<8x128xi32>
    %66 = arith.cmpi eq, %65, %8 : vector<8x128xi32>
    %67 = arith.extui %66 : vector<8x128xi1> to vector<8x128xi32>
    %68 = arith.sitofp %67 : vector<8x128xi32> to vector<8x128xf32>
    %69 = vector.extract_strided_slice %7 {offsets = [0, 6], sizes = [8, 1], strides = [1, 1]} : vector<8x8xf32> to vector<8x1xf32>
    %70 = vector.broadcast %69 : vector<8x1xf32> to vector<8x128xf32>
    %71 = arith.mulf %68, %70 : vector<8x128xf32>
    %72 = arith.addf %63, %71 : vector<8x128xf32>
    %73 = vector.extract_strided_slice %0 {offsets = [0, 7], sizes = [8, 1], strides = [1, 1]} : vector<8x8xi32> to vector<8x1xi32>
    %74 = vector.broadcast %73 : vector<8x1xi32> to vector<8x128xi32>
    %75 = arith.cmpi eq, %74, %8 : vector<8x128xi32>
    %76 = arith.extui %75 : vector<8x128xi1> to vector<8x128xi32>
    %77 = arith.sitofp %76 : vector<8x128xi32> to vector<8x128xf32>
    %78 = vector.extract_strided_slice %7 {offsets = [0, 7], sizes = [8, 1], strides = [1, 1]} : vector<8x8xf32> to vector<8x1xf32>
    %79 = vector.broadcast %78 : vector<8x1xf32> to vector<8x128xf32>
    %80 = arith.mulf %77, %79 : vector<8x128xf32>
    %81 = arith.addf %72, %80 : vector<8x128xf32>
    %c0_5 = arith.constant 0 : index
    %c0_6 = arith.constant 0 : index
    %82 = vector.load %arg3[%c0_5, %c0_6] : memref<128x768xf32, #tpu.memory_space<vmem>>, vector<128x768xf32>
    %cst_7 = arith.constant dense<0.000000e+00> : vector<8x768xf32>
    %83 = tpu.matmul %81, %82, %cst_7 {dimension_numbers = #tpu.dot_dimension_numbers<[1], [0], [0], [1], [0, 0, 1, 1], [], []>} : vector<8x128xf32>, vector<128x768xf32>, vector<8x768xf32> -> vector<8x768xf32>
    %84 = arith.truncf %83 : vector<8x768xf32> to vector<8x768xbf16>
    %c0_8 = arith.constant 0 : index
    %c0_9 = arith.constant 0 : index
    %85 = vector.load %arg4[%c0_8, %c0_9] : memref<768x768xbf16, #tpu.memory_space<vmem>>, vector<768x768xbf16>
    %cst_10 = arith.constant dense<0.000000e+00> : vector<8x768xf32>
    %86 = tpu.matmul %84, %85, %cst_10 {dimension_numbers = #tpu.dot_dimension_numbers<[1], [0], [0], [1], [0, 0, 1, 1], [], []>} : vector<8x768xbf16>, vector<768x768xbf16>, vector<8x768xf32> -> vector<8x768xf32>
    %c0_11 = arith.constant 0 : index
    %c0_12 = arith.constant 0 : index
    %87 = vector.load %arg5[%c0_11, %c0_12] : memref<1x768xf32, #tpu.memory_space<vmem>>, vector<1x768xf32>
    %88 = vector.broadcast %87 : vector<1x768xf32> to vector<8x768xf32>
    %89 = arith.addf %86, %88 : vector<8x768xf32>
    %90 = math.tanh %89 : vector<8x768xf32>
    %c0_13 = arith.constant 0 : index
    %c0_14 = arith.constant 0 : index
    %91 = vector.load %arg6[%c0_13, %c0_14] : memref<768x128xf32, #tpu.memory_space<vmem>>, vector<768x128xf32>
    %cst_15 = arith.constant dense<0.000000e+00> : vector<8x128xf32>
    %92 = tpu.matmul %90, %91, %cst_15 {dimension_numbers = #tpu.dot_dimension_numbers<[1], [0], [0], [1], [0, 0, 1, 1], [], []>} : vector<8x768xf32>, vector<768x128xf32>, vector<8x128xf32> -> vector<8x128xf32>
    %c0_16 = arith.constant 0 : index
    %c0_17 = arith.constant 0 : index
    %93 = vector.load %arg7[%c0_16, %c0_17] : memref<1x128xf32, #tpu.memory_space<vmem>>, vector<1x128xf32>
    %94 = vector.broadcast %93 : vector<1x128xf32> to vector<8x128xf32>
    %95 = arith.addf %92, %94 : vector<8x128xf32>
    %cst_18 = arith.constant 0.000000e+00 : f32
    %96 = vector.broadcast %cst_18 : f32 to vector<8x128xf32>
    %97 = arith.maximumf %95, %96 : vector<8x128xf32>
    %98 = vector.extract_strided_slice %97 {offsets = [0, 0], sizes = [8, 1], strides = [1, 1]} : vector<8x128xf32> to vector<8x1xf32>
    %99 = vector.extract_strided_slice %97 {offsets = [0, 1], sizes = [8, 1], strides = [1, 1]} : vector<8x128xf32> to vector<8x1xf32>
    %100 = arith.subf %99, %98 : vector<8x1xf32>
    %101 = math.exp %100 : vector<8x1xf32>
    %cst_19 = arith.constant 1.000000e+00 : f32
    %102 = vector.broadcast %cst_19 : f32 to vector<8x1xf32>
    %103 = arith.addf %102, %101 : vector<8x1xf32>
    %cst_20 = arith.constant 1.000000e+00 : f32
    %104 = vector.broadcast %cst_20 : f32 to vector<8x1xf32>
    %105 = arith.divf %104, %103 : vector<8x1xf32>
    %cst_21 = arith.constant 1.000000e+00 : f32
    %106 = vector.broadcast %cst_21 : f32 to vector<8x1xf32>
    %107 = arith.subf %106, %105 : vector<8x1xf32>
    %108 = tpu.iota {dimensions = array<i32: 1>} : vector<8x128xi32>
    %c0_i32 = arith.constant 0 : i32
    %109 = vector.broadcast %c0_i32 : i32 to vector<8x128xi32>
    %110 = arith.cmpi eq, %108, %109 : vector<8x128xi32>
    %c1_i32 = arith.constant 1 : i32
    %111 = vector.broadcast %c1_i32 : i32 to vector<8x128xi32>
    %112 = arith.cmpi eq, %108, %111 : vector<8x128xi32>
    %cst_22 = arith.constant 0.000000e+00 : f32
    %113 = vector.shape_cast %107 : vector<8x1xf32> to vector<8x1xf32>
    %114 = vector.broadcast %113 : vector<8x1xf32> to vector<8x128xf32>
    %115 = vector.broadcast %cst_22 : f32 to vector<8x128xf32>
    %116 = arith.select %112, %114, %115 : vector<8x128xi1>, vector<8x128xf32>
    %117 = vector.shape_cast %105 : vector<8x1xf32> to vector<8x1xf32>
    %118 = vector.broadcast %117 : vector<8x1xf32> to vector<8x128xf32>
    %119 = arith.select %110, %118, %116 : vector<8x128xi1>, vector<8x128xf32>
    %c0_23 = arith.constant 0 : index
    %c0_24 = arith.constant 0 : index
    %120 = vector.load %arg8[%c0_23, %c0_24] : memref<8x128xf32, #tpu.memory_space<vmem>>, vector<8x128xf32>
    tpu.vector_store %arg8[%c0_23, %c0_24], %119 {strides = array<i32>} : memref<8x128xf32, #tpu.memory_space<vmem>>, vector<8x128xf32>,
    return
  }
  func.func @transform_0(%arg0: i32) -> (i32, i32) {
    %c0_i32 = arith.constant 0 : i32
    %c0_i32_0 = arith.constant 0 : i32
    return %arg0, %c0_i32 : i32, i32
  }
  func.func @transform_1(%arg0: i32) -> (i32, i32) {
    %c0_i32 = arith.constant 0 : i32
    %c0_i32_0 = arith.constant 0 : i32
    return %arg0, %c0_i32 : i32, i32
  }
  func.func @transform_2(%arg0: i32) -> (i32, i32) {
    %c0_i32 = arith.constant 0 : i32
    %c0_i32_0 = arith.constant 0 : i32
    %c0_i32_1 = arith.constant 0 : i32
    return %c0_i32, %c0_i32_0 : i32, i32
  }
  func.func @transform_3(%arg0: i32) -> (i32, i32) {
    %c0_i32 = arith.constant 0 : i32
    %c0_i32_0 = arith.constant 0 : i32
    %c0_i32_1 = arith.constant 0 : i32
    return %c0_i32, %c0_i32_0 : i32, i32
  }
  func.func @transform_4(%arg0: i32) -> (i32, i32) {
    %c0_i32 = arith.constant 0 : i32
    %c0_i32_0 = arith.constant 0 : i32
    %c0_i32_1 = arith.constant 0 : i32
    return %c0_i32, %c0_i32_0 : i32, i32
  }
  func.func @transform_5(%arg0: i32) -> (i32, i32) {
    %c0_i32 = arith.constant 0 : i32
    %c0_i32_0 = arith.constant 0 : i32
    %c0_i32_1 = arith.constant 0 : i32
    return %c0_i32, %c0_i32_0 : i32, i32
  }
  func.func @transform_6(%arg0: i32) -> (i32, i32) {
    %c0_i32 = arith.constant 0 : i32
    %c0_i32_0 = arith.constant 0 : i32
    %c0_i32_1 = arith.constant 0 : i32
    return %c0_i32, %c0_i32_0 : i32, i32
  }
  func.func @transform_7(%arg0: i32) -> (i32, i32) {
    %c0_i32 = arith.constant 0 : i32
    %c0_i32_0 = arith.constant 0 : i32
    return %arg0, %c0_i32 : i32, i32
  }
}

</mosaic_0001>

<bundles_post_ra>
// kernel: text_classifier_forward.1
= control target key start
LH: loop header
LB: loop body
LE: loop exit
PB: predicated region body
PF: predicated region fallthrough
CT: control target
= control target key end

     0   :  { %vm28_vm0 = vcmask 64512   ;;  %v4029_v1 = vmov 1   ;;  %v4030_v4 = vmov 2   ;;  %v4031_v5 = vmov 3   ;;  %s5667_s1 = inlined_call_operand.vmem [shape: f32[8,8], index: 1, kind: input, shape index: {}]   ;;  %s5668_s0 = inlined_call_operand.vmem [shape: s32[8,8], index: 0, kind: input, shape index: {}]   ;;  %s5669_s2 = inlined_call_operand.vmem [shape: f32[128,768], index: 2, kind: input, shape index: {}]   ;;  %s5670_s3 = inlined_call_operand.vmem [shape: bf16[768,768], index: 3, kind: input, shape index: {}]   ;;  %s5671_s5 = inlined_call_operand.vmem [shape: f32[768,128], index: 5, kind: input, shape index: {}]   ;;  %s5672_s4 = inlined_call_operand.vmem [shape: f32[1,768], index: 4, kind: input, shape index: {}]   ;;  %s5673_s6 = inlined_call_operand.vmem [shape: f32[1,128], index: 6, kind: input, shape index: {}]   ;;  %s5674_s7 = inlined_call_operand.vmem [shape: f32[8,128], index: 7, kind: output, shape index: {}]  }
   0x1   :  { %v27_v0 = vld [vmem:[%s5667_s1] sm:$0xff]  ;;  %3563 = vset.pattern.permute.xlu1 %v4029_v1  ;;  %v4032_v6 = vmov 4   ;;  %v4033_v7 = vmov 5   ;;  %v4034_v8 = vmov 0   ;;  %v4035_v9 = vmov 6   ;;  %v135_v15 = vld [vmem:[%s5669_s2 + $0x8] sm:$0xff] }
   0x2   :  { %v4086_v2 = vld [vmem:[%s5668_s0] sm:$0xff]  ;;  %v29_v3 = vsel %vm28_vm0, %v27_v0, 0.0  ;;  %3562 = vset.pattern.permute.xlu0 %v4034_v8  ;;  %v4036_v10 = vmov 0.0   ;;  %v141_v16 = vld [vmem:[%s5669_s2 + $0x38] sm:$0xff]  ;;  %v140_v19 = vld [vmem:[%s5669_s2 + $0x30] sm:$0xff]  ;;  %v4037_v57 = vmov 7  }
   0x3   :  { %51 = vperm.xlu1 %3563, %v4086_v2   ;;  %30 = vadd.xlane.f32.xlu0 %v29_v3  ;;  %v3330_v17 = vpack.c.bf16 %v141_v16, %v135_v15  ;;  %v134_v18 = vld [vmem:[%s5669_s2] sm:$0xff]  ;;  %v147_v21 = vld [vmem:[%s5669_s2 + $0x68] sm:$0xff]  ;;  %v153_v22 = vld [vmem:[%s5669_s2 + $0x98] sm:$0xff]  ;;  %s4038_s1 = smov 1  }
   0x4   :  { %294 = vmatprep.mubr.f32.mxu0 %v4036_v10  ;;  %v3332_v20 = vpack.c.bf16 %v140_v19, %v134_v18  ;;  %v3334_v23 = vpack.c.bf16 %v153_v22, %v147_v21  ;;  %v146_v24 = vld [vmem:[%s5669_s2 + $0x60] sm:$0xff]  ;;  %v152_v25 = vld [vmem:[%s5669_s2 + $0x90] sm:$0xff]  ;;  %v159_v27 = vld [vmem:[%s5669_s2 + $0xc8] sm:$0xff] }
   0x5   :  { %3331 = vmatprep.subr.bf16.mxu0 %v3330_v17  ;;  %v3336_v26 = vpack.c.bf16 %v152_v25, %v146_v24  ;;  %v165_v28 = vld [vmem:[%s5669_s2 + $0xf8] sm:$0xff]  ;;  %v158_v30 = vld [vmem:[%s5669_s2 + $0xc0] sm:$0xff]  ;;  %v164_v31 = vld [vmem:[%s5669_s2 + $0xf0] sm:$0xff] }
   0x6   :  { %3333 = vmatpush1.bf16.msra.mxu0 %v3332_v20  ;;  %v3338_v29 = vpack.c.bf16 %v165_v28, %v159_v27  ;;  %v3340_v32 = vpack.c.bf16 %v164_v31, %v158_v30  ;;  %v171_v33 = vld [vmem:[%s5669_s2 + $0x128] sm:$0xff]  ;;  %v177_v34 = vld [vmem:[%s5669_s2 + $0x158] sm:$0xff]  ;;  %v170_v36 = vld [vmem:[%s5669_s2 + $0x120] sm:$0xff] }
   0x7   :  { %3564 = vset.pattern.permute.xlu1 %v4030_v4  ;;  %3335 = vmatprep.subr.bf16.mxu0 %v3334_v23  ;;  %v3342_v35 = vpack.c.bf16 %v177_v34, %v171_v33  ;;  %v176_v37 = vld [vmem:[%s5669_s2 + $0x150] sm:$0xff]  ;;  %v183_v39 = vld [vmem:[%s5669_s2 + $0x188] sm:$0xff]  ;;  %v189_v40 = vld [vmem:[%s5669_s2 + $0x1b8] sm:$0xff] }
   0x8   :  { %63 = vperm.xlu1 %3564, %v4086_v2   ;;  %v3344_v38 = vpack.c.bf16 %v176_v37, %v170_v36  ;;  %v3346_v41 = vpack.c.bf16 %v189_v40, %v183_v39  ;;  %v182_v42 = vld [vmem:[%s5669_s2 + $0x180] sm:$0xff]  ;;  %v188_v43 = vld [vmem:[%s5669_s2 + $0x1b0] sm:$0xff]  ;;  %v195_v45 = vld [vmem:[%s5669_s2 + $0x1e8] sm:$0xff] }
   0x9   :  { %v3348_v44 = vpack.c.bf16 %v188_v43, %v182_v42  ;;  %v201_v46 = vld [vmem:[%s5669_s2 + $0x218] sm:$0xff]  ;;  %v194_v48 = vld [vmem:[%s5669_s2 + $0x1e0] sm:$0xff]  ;;  %v200_v49 = vld [vmem:[%s5669_s2 + $0x210] sm:$0xff] }
   0xa   :  { %3337 = vmatpush1.bf16.msra.mxu0 %v3336_v26  ;;  %v3350_v47 = vpack.c.bf16 %v201_v46, %v195_v45  ;;  %v3352_v50 = vpack.c.bf16 %v200_v49, %v194_v48  ;;  %v207_v51 = vld [vmem:[%s5669_s2 + $0x248] sm:$0xff]  ;;  %v213_v52 = vld [vmem:[%s5669_s2 + $0x278] sm:$0xff]  ;;  %v206_v54 = vld [vmem:[%s5669_s2 + $0x240] sm:$0xff] }
   0xb   :  { %3339 = vmatprep.subr.bf16.mxu0 %v3338_v29  ;;  %v3354_v53 = vpack.c.bf16 %v213_v52, %v207_v51  ;;  %v212_v55 = vld [vmem:[%s5669_s2 + $0x270] sm:$0xff]  ;;  %v219_v58 = vld [vmem:[%s5669_s2 + $0x2a8] sm:$0xff]  ;;  %v225_v59 = vld [vmem:[%s5669_s2 + $0x2d8] sm:$0xff]  ;;  %v35_v29 = vlaneseq }
   0xc   :  { %3565 = vset.pattern.permute.xlu1 %v4031_v5  ;;  %v3356_v56 = vpack.c.bf16 %v212_v55, %v206_v54  ;;  %v3358_v60 = vpack.c.bf16 %v225_v59, %v219_v58  ;;  %v218_v61 = vld [vmem:[%s5669_s2 + $0x2a0] sm:$0xff]  ;;  %v224_v62 = vld [vmem:[%s5669_s2 + $0x2d0] sm:$0xff] }
   0xd   :  { %75 = vperm.xlu1 %3565, %v4086_v2   ;;  %v3360_v63 = vpack.c.bf16 %v224_v62, %v218_v61  ;;  %v3602_v16 = vld [vmem:[%s5670_s3 + $0x90] ss:$24 sps:$4 sm:$0xff]   ;;  %v3603_v17 = vld [vmem:[%s5670_s3 + $0xc4] ss:$24 sps:$4 sm:$0xff]   ;;  %v3608_v18 = vld [vmem:[%s5670_s3 + $0xc0] ss:$24 sps:$4 sm:$0xff]  }
   0xe   :  { %3341 = vmatpush1.bf16.msra.mxu0 %v3340_v32  ;;  %v3609_v19 = vld [vmem:[%s5670_s3 + $0xf4] ss:$24 sps:$4 sm:$0xff]   ;;  %v3614_v21 = vld [vmem:[%s5670_s3 + $0xf0] ss:$24 sps:$4 sm:$0xff]   ;;  %v3615_v22 = vld [vmem:[%s5670_s3 + $0x124] ss:$24 sps:$4 sm:$0xff]  }
   0xf   :  { %3343 = vmatprep.subr.bf16.mxu0 %v3342_v35  ;;  %v3620_v24 = vld [vmem:[%s5670_s3 + $0x120] ss:$24 sps:$4 sm:$0xff]   ;;  %v3621_v25 = vld [vmem:[%s5670_s3 + $0x154] ss:$24 sps:$4 sm:$0xff]   ;;  %v3626_v26 = vld [vmem:[%s5670_s3 + $0x150] ss:$24 sps:$4 sm:$0xff]  }
  0x10   :  { %v3627_v28 = vld [vmem:[%s5670_s3 + $0x184] ss:$24 sps:$4 sm:$0xff]   ;;  %v3632_v30 = vld [vmem:[%s5670_s3 + $0x180] ss:$24 sps:$4 sm:$0xff]   ;;  %v3633_v31 = vld [vmem:[%s5670_s3 + $0x1b4] ss:$24 sps:$4 sm:$0xff]  }
  0x11   :  { %3566 = vset.pattern.permute.xlu1 %v4032_v6  ;;  %v4286_v33 = vand.u32 127, %v35_v29  ;;  %v3638_v34 = vld [vmem:[%s5670_s3 + $0x1b0] ss:$24 sps:$4 sm:$0xff]   ;;  %v3639_v35 = vld [vmem:[%s5670_s3 + $0x1e4] ss:$24 sps:$4 sm:$0xff]  }
  0x12   :  { %87 = vperm.xlu1 %3566, %v4086_v2   ;;  %3345 = vmatpush1.bf16.msra.mxu0 %v3344_v38  ;;  %v3644_v38 = vld [vmem:[%s5670_s3 + $0x1e0] ss:$24 sps:$4 sm:$0xff]   ;;  %v3645_v39 = vld [vmem:[%s5670_s3 + $0x214] ss:$24 sps:$4 sm:$0xff]   ;;  %v3650_v45 = vld [vmem:[%s5670_s3 + $0x210] ss:$24 sps:$4 sm:$0xff]  }
  0x13   :  { %3347 = vmatprep.subr.bf16.mxu0 %v3346_v41  ;;  %v3651_v48 = vld [vmem:[%s5670_s3 + $0x244] ss:$24 sps:$4 sm:$0xff]   ;;  %v3662_v61 = vld [vmem:[%s5670_s3 + $0x270] ss:$24 sps:$4 sm:$0xff]   ;;  %vm2910_vm9 = vcmp.eq.s32.totalorder %v4286_v33, 1  ;;  %vm2909_vm10 = vcmp.eq.s32.totalorder %v4286_v33, 0 }
  0x16   :  { %3567 = vset.pattern.permute.xlu1 %v4033_v7  ;;  %3349 = vmatpush1.bf16.msra.mxu0 %v3348_v44 }
  0x17   :  { %99 = vperm.xlu1 %3567, %v4086_v2   ;;  %3351 = vmatprep.subr.bf16.mxu0 %v3350_v47 }
  0x19   :  { %38 = vperm.xlu0 %3562, %v4086_v2  }
  0x1a   :  { %3353 = vmatpush1.bf16.msra.mxu0 %v3352_v50 }
  0x1b   :  { %3568 = vset.pattern.permute.xlu1 %v4035_v9  ;;  %3355 = vmatprep.subr.bf16.mxu0 %v3354_v53  ;;  %v3656_v53 = vld [vmem:[%s5670_s3 + $0x240] ss:$24 sps:$4 sm:$0xff]  }
  0x1c   :  { %111 = vperm.xlu1 %3568, %v4086_v2  }
  0x1d   :  { %3575 = vset.pattern.permute.xlu0 %v4035_v9  ;;  %v3585_v9 = vld [vmem:[%s5670_s3 + $0x34] ss:$24 sps:$4 sm:$0xff]  }
  0x1e   :  { %3357 = vmatpush1.bf16.msra.mxu0 %v3356_v56 }
  0x1f   :  { %3359 = vmatprep.subr.bf16.mxu0 %v3358_v60 }
  0x20   :  { %3569 = vset.pattern.permute.xlu1 %v4034_v8  ;;  %v3584_v8 = vld [vmem:[%s5670_s3] ss:$24 sps:$4 sm:$0xff]  }
  0x22   :  { %3361 = vmatpush1.bf16.msra.mxu0 %v3360_v63  ;;  %v3663_v63 = vld [vmem:[%s5670_s3 + $0x2a4] ss:$24 sps:$4 sm:$0xff]  }
  0x90   :  { %v31_v11 = vpop.xlane.xlu0 %30 }
  0x91   :  { %v32_v12 = vmax.f32 %v31_v11, 1.0 }
  0x93   :  { %4011 = vrcp.f32 %v32_v12  ;;  %v3591_v12 = vld [vmem:[%s5670_s3 + $0x64] ss:$24 sps:$4 sm:$0xff]  }
  0x98   :  { %v39_v36 = vpop.permute.xlu0 %38 }
  0x99   :  { %vm40_vm2 = vcmp.eq.s32.totalorder %v39_v36, %v4286_v33  ;;  %v184_v36 = vld [vmem:[%s5669_s2 + $0x190] sm:$0xff] }
  0x9a   :  { %v2928_v40 = vsel %vm40_vm2, 1.0, %v4036_v10 }
  0x9d   :  { %v4012_v13 = vpop.eup %4011 }
  0x9e   :  { %v4098_v14 = vmul.f32 %v4012_v13, %v27_v0  ;;  %v137_v0 = vld [vmem:[%s5669_s2 + $0x18] sm:$0xff] }
  0x9f   :  { %v3596_v13 = vld [vmem:[%s5670_s3 + $0x60] ss:$24 sps:$4 sm:$0xff]  }
  0xa0   :  { %45 = vperm.xlu1 %3569, %v4098_v14   ;;  %117 = vperm.xlu0 %3575, %v4098_v14  }
  0xa4   :  { %3570 = vset.pattern.permute.xlu1 %v4029_v1  ;;  %3578 = vset.pattern.permute.xlu0 %v4029_v1 }
  0xa5   :  { %57 = vperm.xlu1 %3570, %v4098_v14  }
  0xa9   :  { %3571 = vset.pattern.permute.xlu1 %v4030_v4  ;;  %v4216_v4 = vpop.permute.xlu1 %51 }
  0xaa   :  { %69 = vperm.xlu1 %3571, %v4098_v14   ;;  %vm53_vm1 = vcmp.eq.s32.totalorder %v4216_v4, %v4286_v33 }
  0xab   :  { %v2929_v41 = vsel %vm53_vm1, 1.0, %v4036_v10 }
  0xae   :  { %3572 = vset.pattern.permute.xlu1 %v4031_v5  ;;  %v4218_v5 = vpop.permute.xlu1 %63 }
  0xaf   :  { %81 = vperm.xlu1 %3572, %v4098_v14   ;;  %vm65_vm3 = vcmp.eq.s32.totalorder %v4218_v5, %v4286_v33  ;;  %v136_v5 = vld [vmem:[%s5669_s2 + $0x10] sm:$0xff] }
  0xb0   :  { %v2930_v43 = vsel %vm65_vm3, 1.0, %v4036_v10 }
  0xb3   :  { %3573 = vset.pattern.permute.xlu1 %v4032_v6  ;;  %v4220_v6 = vpop.permute.xlu1 %75 }
  0xb4   :  { %93 = vperm.xlu1 %3573, %v4098_v14   ;;  %vm77_vm4 = vcmp.eq.s32.totalorder %v4220_v6, %v4286_v33  ;;  %v142_v6 = vld [vmem:[%s5669_s2 + $0x40] sm:$0xff] }
  0xb5   :  { %v2931_v49 = vsel %vm77_vm4, 1.0, %v4036_v10 }
  0xb7   :  { %v4234_v11 = vpop.permute.xlu1 %87 }
  0xb8   :  { %3574 = vset.pattern.permute.xlu1 %v4033_v7  ;;  %v3579_v7 = vld [vmem:[%s5670_s3 + $0x4] ss:$24 sps:$4 sm:$0xff]   ;;  %vm89_vm5 = vcmp.eq.s32.totalorder %v4234_v11, %v4286_v33 }
  0xb9   :  { %105 = vperm.xlu1 %3574, %v4098_v14   ;;  %2209 = vmatprep.subr.bf16.mxu1 %v3579_v7  ;;  %v2932_v52 = vsel %vm89_vm5, 1.0, %v4036_v10 }
  0xba   :  { %2210 = vmatpush1.bf16.msra.mxu1 %v3584_v8  ;;  %v149_v8 = vld [vmem:[%s5669_s2 + $0x78] sm:$0xff] }
  0xbb   :  { %2211 = vmatprep.subr.bf16.mxu1 %v3585_v9  ;;  %v4245_v15 = vpop.permute.xlu1 %99  ;;  %v155_v9 = vld [vmem:[%s5669_s2 + $0xa8] sm:$0xff] }
  0xbc   :  { %vm101_vm6 = vcmp.eq.s32.totalorder %v4245_v15, %v4286_v33  ;;  %v148_v15 = vld [vmem:[%s5669_s2 + $0x70] sm:$0xff] }
  0xbd   :  { %3576 = vset.pattern.permute.xlu1 %v4037_v57  ;;  %v3657_v57 = vld [vmem:[%s5670_s3 + $0x274] ss:$24 sps:$4 sm:$0xff]   ;;  %v2933_v58 = vsel %vm101_vm6, 1.0, %v4036_v10 }
  0xbe   :  { %123 = vperm.xlu1 %3576, %v4086_v2   ;;  %v143_v2 = vld [vmem:[%s5669_s2 + $0x48] sm:$0xff] }
  0xbf   :  { %v3362_v3 = vpack.c.bf16 %v143_v2, %v137_v0  ;;  %v4259_v20 = vpop.permute.xlu1 %111 }
  0xc0   :  { %vm113_vm7 = vcmp.eq.s32.totalorder %v4259_v20, %v4286_v33 }
  0xc1   :  { %3363 = vmatprep.subr.bf16.mxu0 %v3362_v3  ;;  %v3668_v3 = vld [vmem:[%s5670_s3 + $0x2a0] ss:$24 sps:$4 sm:$0xff]   ;;  %v2934_v7 = vsel %vm113_vm7, 1.0, %v4036_v10 }
  0xc2   :  { %129 = vperm.xlu1 %3576, %v4098_v14   ;;  %v3597_v14 = vld [vmem:[%s5670_s3 + $0x94] ss:$24 sps:$4 sm:$0xff]  }
  0xc6   :  { %3577 = vset.pattern.permute.xlu1 %v4029_v1  ;;  %v3590_v1 = vld [vmem:[%s5670_s3 + $0x30] ss:$24 sps:$4 sm:$0xff]  }
  0xc7   :  { %2212 = vmatpush1.bf16.msra.mxu1 %v3590_v1 }
  0xc8   :  { %2213 = vmatprep.subr.bf16.mxu1 %v3591_v12 }
  0xcb   :  { %2214 = vmatpush1.bf16.msra.mxu1 %v3596_v13 }
  0xcc   :  { %2215 = vmatprep.subr.bf16.mxu1 %v3597_v14 }
  0xcf   :  { %2216 = vmatpush1.bf16.msra.mxu1 %v3602_v16  ;;  %v154_v16 = vld [vmem:[%s5669_s2 + $0xa0] sm:$0xff] }
  0xd0   :  { %2217 = vmatprep.subr.bf16.mxu1 %v3603_v17  ;;  %v3364_v17 = vpack.c.bf16 %v142_v6, %v136_v5  ;;  %v163_v6 = vld [vmem:[%s5669_s2 + $0xe8] sm:$0xff] }
  0xd3   :  { %2218 = vmatpush1.bf16.msra.mxu1 %v3608_v18  ;;  %v161_v18 = vld [vmem:[%s5669_s2 + $0xd8] sm:$0xff] }
  0xd4   :  { %2219 = vmatprep.subr.bf16.mxu1 %v3609_v19  ;;  %v167_v19 = vld [vmem:[%s5669_s2 + $0x108] sm:$0xff] }
  0xd7   :  { %2220 = vmatpush1.bf16.msra.mxu1 %v3614_v21  ;;  %v3366_v21 = vpack.c.bf16 %v155_v9, %v149_v8  ;;  %v162_v9 = vld [vmem:[%s5669_s2 + $0xe0] sm:$0xff] }
  0xd8   :  { %2221 = vmatprep.subr.bf16.mxu1 %v3615_v22  ;;  %v160_v22 = vld [vmem:[%s5669_s2 + $0xd0] sm:$0xff] }
  0xdb   :  { %2222 = vmatpush1.bf16.msra.mxu1 %v3620_v24  ;;  %v3368_v24 = vpack.c.bf16 %v154_v16, %v148_v15  ;;  %v174_v15 = vld [vmem:[%s5669_s2 + $0x140] sm:$0xff]  ;;  %v180_v16 = vld [vmem:[%s5669_s2 + $0x170] sm:$0xff] }
  0xdc   :  { %2223 = vmatprep.subr.bf16.mxu1 %v3621_v25  ;;  %v173_v25 = vld [vmem:[%s5669_s2 + $0x138] sm:$0xff] }
  0xdf   :  { %2224 = vmatpush1.bf16.msra.mxu1 %v3626_v26  ;;  %v179_v26 = vld [vmem:[%s5669_s2 + $0x168] sm:$0xff] }
  0xe0   :  { %2225 = vmatprep.subr.bf16.mxu1 %v3627_v28  ;;  %v172_v28 = vld [vmem:[%s5669_s2 + $0x130] sm:$0xff] }
  0xe3   :  { %2226 = vmatpush1.bf16.msra.mxu1 %v3632_v30  ;;  %v178_v30 = vld [vmem:[%s5669_s2 + $0x160] sm:$0xff] }
  0xe4   :  { %2227 = vmatprep.subr.bf16.mxu1 %v3633_v31 }
  0xe7   :  { %2228 = vmatpush1.bf16.msra.mxu1 %v3638_v34  ;;  %v191_v34 = vld [vmem:[%s5669_s2 + $0x1c8] sm:$0xff] }
  0xe8   :  { %2229 = vmatprep.subr.bf16.mxu1 %v3639_v35  ;;  %v3374_v35 = vpack.c.bf16 %v179_v26, %v173_v25  ;;  %v205_v25 = vld [vmem:[%s5669_s2 + $0x238] sm:$0xff] }
  0xeb   :  { %2230 = vmatpush1.bf16.msra.mxu1 %v3644_v38  ;;  %v3376_v38 = vpack.c.bf16 %v178_v30, %v172_v28  ;;  %v204_v28 = vld [vmem:[%s5669_s2 + $0x230] sm:$0xff] }
  0xec   :  { %2231 = vmatprep.subr.bf16.mxu1 %v3645_v39  ;;  %v197_v39 = vld [vmem:[%s5669_s2 + $0x1f8] sm:$0xff] }
  0xef   :  { %2232 = vmatpush1.bf16.msra.mxu1 %v3650_v45  ;;  %v209_v45 = vld [vmem:[%s5669_s2 + $0x258] sm:$0xff] }
  0xf0   :  { %2233 = vmatprep.subr.bf16.mxu1 %v3651_v48  ;;  %v208_v48 = vld [vmem:[%s5669_s2 + $0x250] sm:$0xff] }
  0xf3   :  { %2234 = vmatpush1.bf16.msra.mxu1 %v3656_v53 }
  0xf4   :  { %2235 = vmatprep.subr.bf16.mxu1 %v3657_v57  ;;  %v139_v57 = vld [vmem:[%s5669_s2 + $0x28] sm:$0xff] }
  0xf7   :  { %2236 = vmatpush1.bf16.msra.mxu1 %v3662_v61  ;;  %v144_v61 = vld [vmem:[%s5669_s2 + $0x50] sm:$0xff] }
  0xf8   :  { %2237 = vmatprep.subr.bf16.mxu1 %v3663_v63  ;;  %v151_v63 = vld [vmem:[%s5669_s2 + $0x88] sm:$0xff] }
  0xfb   :  { %2238 = vmatpush1.bf16.msra.mxu1 %v3668_v3  ;;  %v150_v3 = vld [vmem:[%s5669_s2 + $0x80] sm:$0xff] }
 0x11f   :  { %v46_v23 = vpop.permute.xlu1 %45  ;;  %v118_v0 = vpop.permute.xlu0 %117 }
 0x120   :  { %v48_v46 = vmul.f32 %v2928_v40, %v46_v23  ;;  %v120_v1 = vmul.f32 %v2934_v7, %v118_v0  ;;  %v166_v23 = vld [vmem:[%s5669_s2 + $0x100] sm:$0xff]  ;;  %v203_v40 = vld [vmem:[%s5669_s2 + $0x228] sm:$0xff]  ;;  %v157_v0 = vld [vmem:[%s5669_s2 + $0xb8] sm:$0xff] }
 0x121   :  { %v3372_v31 = vpack.c.bf16 %v166_v23, %v160_v22  ;;  %v169_v7 = vld [vmem:[%s5669_s2 + $0x118] sm:$0xff]  ;;  %v3398_v8 = vpack.c.bf16 %v157_v0, %v151_v63  ;;  %v192_v22 = vld [vmem:[%s5669_s2 + $0x1d0] sm:$0xff]  ;;  %v3408_v23 = vpack.c.bf16 %v180_v16, %v174_v15  ;;  %v3631_v0 = vld [vmem:[%s5670_s3 + $0x18c] ss:$24 sps:$4 sm:$0xff]  }
 0x122   :  { %v3623_v63 = vld [vmem:[%s5670_s3 + $0x158] ss:$24 sps:$4 sm:$0xff]   ;;  %v3673_v15 = vld [vmem:[%s5670_s3 + $0x2dc] ss:$24 sps:$4 sm:$0xff]  }
 0x123   :  { %v3671_v16 = vld [vmem:[%s5670_s3 + $0x2d8] ss:$24 sps:$4 sm:$0xff]  }
 0x124   :  { %v58_v27 = vpop.permute.xlu1 %57 }
 0x125   :  { %v60_v42 = vmul.f32 %v2929_v41, %v58_v27  ;;  %v3370_v27 = vpack.c.bf16 %v167_v19, %v161_v18  ;;  %v187_v18 = vld [vmem:[%s5669_s2 + $0x1a8] sm:$0xff] }
 0x127   :  { %v61_v50 = vadd.f32 %v60_v42, %v48_v46  ;;  %v196_v42 = vld [vmem:[%s5669_s2 + $0x1f0] sm:$0xff]  ;;  %v215_v46 = vld [vmem:[%s5669_s2 + $0x288] sm:$0xff] }
 0x128   :  { %v3386_v53 = vpack.c.bf16 %v215_v46, %v209_v45  ;;  %v3583_v46 = vld [vmem:[%s5670_s3 + $0xc] ss:$24 sps:$4 sm:$0xff]  }
 0x129   :  { %v70_v32 = vpop.permute.xlu1 %69 }
 0x12a   :  { %v72_v47 = vmul.f32 %v2930_v43, %v70_v32  ;;  %v185_v32 = vld [vmem:[%s5669_s2 + $0x198] sm:$0xff]  ;;  %v202_v43 = vld [vmem:[%s5669_s2 + $0x220] sm:$0xff] }
 0x12b   :  { %v3378_v41 = vpack.c.bf16 %v191_v34, %v185_v32  ;;  %v217_v32 = vld [vmem:[%s5669_s2 + $0x298] sm:$0xff] }
 0x12c   :  { %v73_v54 = vadd.f32 %v72_v47, %v61_v50  ;;  %v3382_v47 = vpack.c.bf16 %v203_v40, %v197_v39  ;;  %v3384_v50 = vpack.c.bf16 %v202_v43, %v196_v42  ;;  %v229_v39 = vld [vmem:[%s5669_s2 + $0x2f8] sm:$0xff]  ;;  %v222_v43 = vld [vmem:[%s5669_s2 + $0x2c0] sm:$0xff] }
 0x12e   :  { %v82_v37 = vpop.permute.xlu1 %81 }
 0x12f   :  { %v84_v51 = vmul.f32 %v2931_v49, %v82_v37  ;;  %v190_v37 = vld [vmem:[%s5669_s2 + $0x1c0] sm:$0xff] }
 0x130   :  { %v214_v49 = vld [vmem:[%s5669_s2 + $0x280] sm:$0xff] }
 0x131   :  { %v85_v59 = vadd.f32 %v84_v51, %v73_v54  ;;  %v221_v51 = vld [vmem:[%s5669_s2 + $0x2b8] sm:$0xff]  ;;  %v220_v54 = vld [vmem:[%s5669_s2 + $0x2b0] sm:$0xff] }
 0x133   :  { %v94_v44 = vpop.permute.xlu1 %93 }
 0x134   :  { %v96_v55 = vmul.f32 %v2932_v52, %v94_v44  ;;  %v3380_v44 = vpack.c.bf16 %v190_v37, %v184_v36  ;;  %v227_v52 = vld [vmem:[%s5669_s2 + $0x2e8] sm:$0xff]  ;;  %v216_v36 = vld [vmem:[%s5669_s2 + $0x290] sm:$0xff] }
 0x136   :  { %v97_v62 = vadd.f32 %v96_v55, %v85_v59  ;;  %v226_v55 = vld [vmem:[%s5669_s2 + $0x2e0] sm:$0xff]  ;;  %v3390_v59 = vpack.c.bf16 %v227_v52, %v221_v51  ;;  %v3599_v52 = vld [vmem:[%s5670_s3 + $0x98] ss:$24 sps:$4 sm:$0xff]  }
 0x137   :  { %v3593_v51 = vld [vmem:[%s5670_s3 + $0x68] ss:$24 sps:$4 sm:$0xff]  }
 0x138   :  { %v106_v56 = vpop.permute.xlu1 %105 }
 0x139   :  { %v108_v60 = vmul.f32 %v2933_v58, %v106_v56  ;;  %v3388_v56 = vpack.c.bf16 %v214_v49, %v208_v48  ;;  %v145_v58 = vld [vmem:[%s5669_s2 + $0x58] sm:$0xff] }
 0x13a   :  { %v3589_v48 = vld [vmem:[%s5670_s3 + $0x3c] ss:$24 sps:$4 sm:$0xff]   ;;  %v3587_v49 = vld [vmem:[%s5670_s3 + $0x38] ss:$24 sps:$4 sm:$0xff]  }
 0x13b   :  { %v109_v4 = vadd.f32 %v108_v60, %v97_v62  ;;  %v138_v60 = vld [vmem:[%s5669_s2 + $0x20] sm:$0xff]  ;;  %v3392_v62 = vpack.c.bf16 %v226_v55, %v220_v54  ;;  %v3613_v55 = vld [vmem:[%s5670_s3 + $0xfc] ss:$24 sps:$4 sm:$0xff]  }
 0x13c   :  { %v3396_v5 = vpack.c.bf16 %v144_v61, %v138_v60  ;;  %v3605_v54 = vld [vmem:[%s5670_s3 + $0xc8] ss:$24 sps:$4 sm:$0xff]   ;;  %v3625_v61 = vld [vmem:[%s5670_s3 + $0x15c] ss:$24 sps:$4 sm:$0xff]  }
 0x13d   :  { %v124_v2 = vpop.permute.xlu1 %123  ;;  %v121_v13 = vadd.f32 %v120_v1, %v109_v4  ;;  %v156_v4 = vld [vmem:[%s5669_s2 + $0xb0] sm:$0xff]  ;;  %v3617_v60 = vld [vmem:[%s5670_s3 + $0x128] ss:$24 sps:$4 sm:$0xff]  }
 0x13e   :  { %vm125_vm8 = vcmp.eq.s32.totalorder %v124_v2, %v4286_v33  ;;  %v3394_v2 = vpack.c.bf16 %v145_v58, %v139_v57  ;;  %v168_v1 = vld [vmem:[%s5669_s2 + $0x110] sm:$0xff]  ;;  %v3619_v57 = vld [vmem:[%s5670_s3 + $0x12c] ss:$24 sps:$4 sm:$0xff]  }
 0x13f   :  { %v2935_v11 = vsel %vm125_vm8, 1.0, %v4036_v10  ;;  %v3669_v58 = vld [vmem:[%s5670_s3 + $0x2d4] ss:$24 sps:$4 sm:$0xff]  }
 0x140   :  { %2239 = vmatprep.subr.bf16.mxu1 %v3669_v58  ;;  %v3723_v58 = vld [vmem:[%s5670_s3 + $0x480] ss:$24 sps:$4 sm:$0xff]  }
 0x141   :  { %v130_v12 = vpop.permute.xlu1 %129 }
 0x142   :  { %v132_v14 = vmul.f32 %v2935_v11, %v130_v12  ;;  %v3400_v11 = vpack.c.bf16 %v156_v4, %v150_v3  ;;  %v175_v12 = vld [vmem:[%s5669_s2 + $0x148] sm:$0xff]  ;;  %v3637_v3 = vld [vmem:[%s5670_s3 + $0x1bc] ss:$24 sps:$4 sm:$0xff]   ;;  %v3635_v4 = vld [vmem:[%s5670_s3 + $0x1b8] ss:$24 sps:$4 sm:$0xff]  }
 0x144   :  { %v4367_v20 = vadd.f32 %v132_v14, %v121_v13  ;;  %v181_v13 = vld [vmem:[%s5669_s2 + $0x178] sm:$0xff]  ;;  %v3402_v14 = vpack.c.bf16 %v169_v7, %v163_v6  ;;  %v3641_v6 = vld [vmem:[%s5670_s3 + $0x1e8] ss:$24 sps:$4 sm:$0xff]  }
 0x145   :  { %v3406_v19 = vpack.c.bf16 %v181_v13, %v175_v12  ;;  %v3649_v7 = vld [vmem:[%s5670_s3 + $0x21c] ss:$24 sps:$4 sm:$0xff]   ;;  %v3659_v12 = vld [vmem:[%s5670_s3 + $0x278] ss:$24 sps:$4 sm:$0xff]   ;;  %v3667_v13 = vld [vmem:[%s5670_s3 + $0x2ac] ss:$24 sps:$4 sm:$0xff]  }
 0x146   :  { %295 = vmatmul.mubr.f32.vlgmr.msra.gmra.mrb[0].mxu0 %v4367_v20 }
 0x147   :  { %3365 = vmatpush1.bf16.msra.mxu0 %v3364_v17  ;;  %365 = vmatprep.mubr.f32.mxu0 %v4036_v10  ;;  %v3404_v17 = vpack.c.bf16 %v168_v1, %v162_v9  ;;  %v3655_v9 = vld [vmem:[%s5670_s3 + $0x24c] ss:$24 sps:$4 sm:$0xff]   ;;  %v3653_v1 = vld [vmem:[%s5670_s3 + $0x248] ss:$24 sps:$4 sm:$0xff]  }
 0x148   :  { %3367 = vmatprep.subr.bf16.mxu0 %v3366_v21  ;;  %v186_v21 = vld [vmem:[%s5669_s2 + $0x1a0] sm:$0xff] }
 0x149   :  { %v3412_v30 = vpack.c.bf16 %v192_v22, %v186_v21  ;;  %v3675_v21 = vld [vmem:[%s5670_s3 + $0x300] ss:$24 sps:$4 sm:$0xff]  }
 0x14a   :  { %v3678_v22 = vld [vmem:[%s5670_s3 + $0x308] ss:$24 sps:$4 sm:$0xff]  }
 0x14b   :  { %3369 = vmatpush1.bf16.msra.mxu0 %v3368_v24  ;;  %v199_v24 = vld [vmem:[%s5669_s2 + $0x208] sm:$0xff] }
 0x14c   :  { %3371 = vmatprep.subr.bf16.mxu0 %v3370_v27  ;;  %v198_v27 = vld [vmem:[%s5669_s2 + $0x200] sm:$0xff]  ;;  %v3414_v34 = vpack.c.bf16 %v205_v25, %v199_v24  ;;  %v3683_v24 = vld [vmem:[%s5670_s3 + $0x334] ss:$24 sps:$4 sm:$0xff]  }
 0x14d   :  { %v3416_v37 = vpack.c.bf16 %v204_v28, %v198_v27  ;;  %v3686_v25 = vld [vmem:[%s5670_s3 + $0x33c] ss:$24 sps:$4 sm:$0xff]   ;;  %v3684_v27 = vld [vmem:[%s5670_s3 + $0x338] ss:$24 sps:$4 sm:$0xff]  }
 0x14e   :  { %v3689_v28 = vld [vmem:[%s5670_s3 + $0x364] ss:$24 sps:$4 sm:$0xff]  }
 0x14f   :  { %3373 = vmatpush1.bf16.msra.mxu0 %v3372_v31  ;;  %v211_v31 = vld [vmem:[%s5669_s2 + $0x268] sm:$0xff] }
 0x150   :  { %3375 = vmatprep.subr.bf16.mxu0 %v3374_v35  ;;  %v210_v35 = vld [vmem:[%s5669_s2 + $0x260] sm:$0xff]  ;;  %v3418_v40 = vpack.c.bf16 %v217_v32, %v211_v31 }
 0x151   :  { %v3687_v31 = vld [vmem:[%s5670_s3 + $0x360] ss:$24 sps:$4 sm:$0xff]  }
 0x152   :  { %v3690_v32 = vld [vmem:[%s5670_s3 + $0x368] ss:$24 sps:$4 sm:$0xff]  }
 0x153   :  { %3377 = vmatpush1.bf16.msra.mxu0 %v3376_v38  ;;  %v223_v38 = vld [vmem:[%s5669_s2 + $0x2c8] sm:$0xff] }
 0x154   :  { %3379 = vmatprep.subr.bf16.mxu0 %v3378_v41  ;;  %v3420_v41 = vpack.c.bf16 %v216_v36, %v210_v35  ;;  %v3422_v42 = vpack.c.bf16 %v229_v39, %v223_v38  ;;  %v3698_v35 = vld [vmem:[%s5670_s3 + $0x39c] ss:$24 sps:$4 sm:$0xff]   ;;  %v3693_v36 = vld [vmem:[%s5670_s3 + $0x390] ss:$24 sps:$4 sm:$0xff]   ;;  %v3704_v39 = vld [vmem:[%s5670_s3 + $0x3cc] ss:$24 sps:$4 sm:$0xff]  }
 0x155   :  { %v3701_v38 = vld [vmem:[%s5670_s3 + $0x3c4] ss:$24 sps:$4 sm:$0xff]  }
 0x157   :  { %3381 = vmatpush1.bf16.msra.mxu0 %v3380_v44  ;;  %v228_v44 = vld [vmem:[%s5669_s2 + $0x2f0] sm:$0xff] }
 0x158   :  { %3383 = vmatprep.subr.bf16.mxu0 %v3382_v47  ;;  %v3424_v45 = vpack.c.bf16 %v228_v44, %v222_v43  ;;  %v3581_v47 = vld [vmem:[%s5670_s3 + $0x8] ss:$24 sps:$4 sm:$0xff]   ;;  %v3710_v43 = vld [vmem:[%s5670_s3 + $0x3fc] ss:$24 sps:$4 sm:$0xff]  }
 0x159   :  { %v3705_v44 = vld [vmem:[%s5670_s3 + $0x3f0] ss:$24 sps:$4 sm:$0xff]  }
 0x15b   :  { %3385 = vmatpush1.bf16.msra.mxu0 %v3384_v50  ;;  %v3595_v50 = vld [vmem:[%s5670_s3 + $0x6c] ss:$24 sps:$4 sm:$0xff]  }
 0x15c   :  { %3387 = vmatprep.subr.bf16.mxu0 %v3386_v53  ;;  %v3607_v53 = vld [vmem:[%s5670_s3 + $0xcc] ss:$24 sps:$4 sm:$0xff]  }
 0x15f   :  { %3389 = vmatpush1.bf16.msra.mxu0 %v3388_v56  ;;  %v3611_v56 = vld [vmem:[%s5670_s3 + $0xf8] ss:$24 sps:$4 sm:$0xff]  }
 0x160   :  { %3391 = vmatprep.subr.bf16.mxu0 %v3390_v59  ;;  %v3674_v59 = vld [vmem:[%s5670_s3 + $0x2d0] ss:$24 sps:$4 sm:$0xff]  }
 0x161   :  { %2240 = vmatpush1.bf16.msra.mxu1 %v3674_v59  ;;  %v3726_v59 = vld [vmem:[%s5670_s3 + $0x488] ss:$24 sps:$4 sm:$0xff]  }
 0x163   :  { %3393 = vmatpush1.bf16.msra.mxu0 %v3392_v62  ;;  %v3677_v62 = vld [vmem:[%s5670_s3 + $0x304] ss:$24 sps:$4 sm:$0xff]  }
 0x164   :  { %3395 = vmatprep.subr.bf16.mxu0 %v3394_v2  ;;  %2250 = vmatprep.subr.bf16.mxu1 %v3677_v62  ;;  %v3629_v2 = vld [vmem:[%s5670_s3 + $0x188] ss:$24 sps:$4 sm:$0xff]  }
 0x165   :  { %v3729_v62 = vld [vmem:[%s5670_s3 + $0x4b0] ss:$24 sps:$4 sm:$0xff]  }
 0x166   :  { %366 = vmatmul.mubr.f32.vlgmr.msra.gmra.mrb[2].mxu0 %v4367_v20 }
 0x167   :  { %3397 = vmatpush1.bf16.msra.mxu0 %v3396_v5  ;;  %436 = vmatprep.mubr.f32.mxu0 %v4036_v10  ;;  %v193_v10 = vld [vmem:[%s5669_s2 + $0x1d8] sm:$0xff]  ;;  %v3643_v5 = vld [vmem:[%s5670_s3 + $0x1ec] ss:$24 sps:$4 sm:$0xff]  }
 0x168   :  { %3399 = vmatprep.subr.bf16.mxu0 %v3398_v8  ;;  %v3410_v26 = vpack.c.bf16 %v193_v10, %v187_v18  ;;  %v3647_v8 = vld [vmem:[%s5670_s3 + $0x218] ss:$24 sps:$4 sm:$0xff]  }
 0x16b   :  { %3401 = vmatpush1.bf16.msra.mxu0 %v3400_v11  ;;  %v3661_v11 = vld [vmem:[%s5670_s3 + $0x27c] ss:$24 sps:$4 sm:$0xff]  }
 0x16c   :  { %3403 = vmatprep.subr.bf16.mxu0 %v3402_v14  ;;  %v3665_v14 = vld [vmem:[%s5670_s3 + $0x2a8] ss:$24 sps:$4 sm:$0xff]  }
 0x16f   :  { %3405 = vmatpush1.bf16.msra.mxu0 %v3404_v17  ;;  %v3680_v17 = vld [vmem:[%s5670_s3 + $0x30c] ss:$24 sps:$4 sm:$0xff]  }
 0x170   :  { %3407 = vmatprep.subr.bf16.mxu0 %v3406_v19 }
 0x173   :  { %3409 = vmatpush1.bf16.msra.mxu0 %v3408_v23 }
 0x174   :  { %3411 = vmatprep.subr.bf16.mxu0 %v3410_v26  ;;  %v3681_v26 = vld [vmem:[%s5670_s3 + $0x330] ss:$24 sps:$4 sm:$0xff]  }
 0x177   :  { %3413 = vmatpush1.bf16.msra.mxu0 %v3412_v30  ;;  %v3692_v30 = vld [vmem:[%s5670_s3 + $0x36c] ss:$24 sps:$4 sm:$0xff]  }
 0x178   :  { %3415 = vmatprep.subr.bf16.mxu0 %v3414_v34  ;;  %v3695_v34 = vld [vmem:[%s5670_s3 + $0x394] ss:$24 sps:$4 sm:$0xff]  }
 0x17b   :  { %3417 = vmatpush1.bf16.msra.mxu0 %v3416_v37  ;;  %v3696_v37 = vld [vmem:[%s5670_s3 + $0x398] ss:$24 sps:$4 sm:$0xff]  }
 0x17c   :  { %3419 = vmatprep.subr.bf16.mxu0 %v3418_v40  ;;  %v3699_v40 = vld [vmem:[%s5670_s3 + $0x3c0] ss:$24 sps:$4 sm:$0xff]  }
 0x17f   :  { %3421 = vmatpush1.bf16.msra.mxu0 %v3420_v41  ;;  %v3702_v41 = vld [vmem:[%s5670_s3 + $0x3c8] ss:$24 sps:$4 sm:$0xff]  }
 0x180   :  { %3423 = vmatprep.subr.bf16.mxu0 %v3422_v42  ;;  %v3707_v42 = vld [vmem:[%s5670_s3 + $0x3f4] ss:$24 sps:$4 sm:$0xff]  }
 0x183   :  { %3425 = vmatpush1.bf16.msra.mxu0 %v3424_v45  ;;  %v3708_v45 = vld [vmem:[%s5670_s3 + $0x3f8] ss:$24 sps:$4 sm:$0xff]  }
 0x184   :  { %2332 = vmatprep.subr.bf16.mxu0 %v3583_v46  ;;  %v3713_v46 = vld [vmem:[%s5670_s3 + $0x424] ss:$24 sps:$4 sm:$0xff]  }
 0x186   :  { %437 = vmatmul.mubr.f32.vlgmr.msra.gmra.mrb[4].mxu0 %v4367_v20  ;;  %v3601_v20 = vld [vmem:[%s5670_s3 + $0x9c] ss:$24 sps:$4 sm:$0xff]  }
 0x187   :  { %2333 = vmatpush1.bf16.msra.mxu0 %v3581_v47  ;;  %v3716_v47 = vld [vmem:[%s5670_s3 + $0x42c] ss:$24 sps:$4 sm:$0xff]  }
 0x188   :  { %2334 = vmatprep.subr.bf16.mxu0 %v3589_v48  ;;  %v3711_v48 = vld [vmem:[%s5670_s3 + $0x420] ss:$24 sps:$4 sm:$0xff]  }
 0x18b   :  { %2335 = vmatpush1.bf16.msra.mxu0 %v3587_v49  ;;  %v3714_v49 = vld [vmem:[%s5670_s3 + $0x428] ss:$24 sps:$4 sm:$0xff]  }
 0x18c   :  { %2336 = vmatprep.subr.bf16.mxu0 %v3595_v50  ;;  %v3719_v50 = vld [vmem:[%s5670_s3 + $0x454] ss:$24 sps:$4 sm:$0xff]  }
 0x18f   :  { %2337 = vmatpush1.bf16.msra.mxu0 %v3593_v51  ;;  %v3722_v51 = vld [vmem:[%s5670_s3 + $0x45c] ss:$24 sps:$4 sm:$0xff]  }
 0x190   :  { %2338 = vmatprep.subr.bf16.mxu0 %v3601_v20  ;;  %v3717_v20 = vld [vmem:[%s5670_s3 + $0x450] ss:$24 sps:$4 sm:$0xff]  }
 0x193   :  { %2339 = vmatpush1.bf16.msra.mxu0 %v3599_v52  ;;  %v3720_v52 = vld [vmem:[%s5670_s3 + $0x458] ss:$24 sps:$4 sm:$0xff]  }
 0x194   :  { %2340 = vmatprep.subr.bf16.mxu0 %v3607_v53  ;;  %v3725_v53 = vld [vmem:[%s5670_s3 + $0x484] ss:$24 sps:$4 sm:$0xff]  }
 0x197   :  { %2341 = vmatpush1.bf16.msra.mxu0 %v3605_v54  ;;  %v3728_v54 = vld [vmem:[%s5670_s3 + $0x48c] ss:$24 sps:$4 sm:$0xff]  }
 0x198   :  { %2342 = vmatprep.subr.bf16.mxu0 %v3613_v55 }
 0x19b   :  { %2343 = vmatpush1.bf16.msra.mxu0 %v3611_v56 }
 0x19c   :  { %2344 = vmatprep.subr.bf16.mxu0 %v3619_v57 }
 0x19f   :  { %2345 = vmatpush1.bf16.msra.mxu0 %v3617_v60  ;;  %v3731_v60 = vld [vmem:[%s5670_s3 + $0x4b4] ss:$24 sps:$4 sm:$0xff]  }
 0x1a0   :  { %2346 = vmatprep.subr.bf16.mxu0 %v3625_v61  ;;  %v3734_v61 = vld [vmem:[%s5670_s3 + $0x4bc] ss:$24 sps:$4 sm:$0xff]  }
 0x1a3   :  { %2347 = vmatpush1.bf16.msra.mxu0 %v3623_v63  ;;  %v3732_v63 = vld [vmem:[%s5670_s3 + $0x4b8] ss:$24 sps:$4 sm:$0xff]  }
 0x1a4   :  { %2348 = vmatprep.subr.bf16.mxu0 %v3631_v0  ;;  %v3737_v0 = vld [vmem:[%s5670_s3 + $0x4e4] ss:$24 sps:$4 sm:$0xff]  }
 0x1a7   :  { %2349 = vmatpush1.bf16.msra.mxu0 %v3629_v2  ;;  %v3740_v2 = vld [vmem:[%s5670_s3 + $0x4ec] ss:$24 sps:$4 sm:$0xff]  }
 0x1a8   :  { %2350 = vmatprep.subr.bf16.mxu0 %v3637_v3  ;;  %v3735_v3 = vld [vmem:[%s5670_s3 + $0x4e0] ss:$24 sps:$4 sm:$0xff]  }
 0x1ab   :  { %2351 = vmatpush1.bf16.msra.mxu0 %v3635_v4  ;;  %v3738_v4 = vld [vmem:[%s5670_s3 + $0x4e8] ss:$24 sps:$4 sm:$0xff]  }
 0x1ac   :  { %2352 = vmatprep.subr.bf16.mxu0 %v3643_v5  ;;  %v3743_v5 = vld [vmem:[%s5670_s3 + $0x514] ss:$24 sps:$4 sm:$0xff]  }
 0x1af   :  { %2353 = vmatpush1.bf16.msra.mxu0 %v3641_v6  ;;  %v3746_v6 = vld [vmem:[%s5670_s3 + $0x51c] ss:$24 sps:$4 sm:$0xff]  }
 0x1b0   :  { %2354 = vmatprep.subr.bf16.mxu0 %v3649_v7  ;;  %v3741_v7 = vld [vmem:[%s5670_s3 + $0x510] ss:$24 sps:$4 sm:$0xff]  }
 0x1b3   :  { %2355 = vmatpush1.bf16.msra.mxu0 %v3647_v8  ;;  %v3744_v8 = vld [vmem:[%s5670_s3 + $0x518] ss:$24 sps:$4 sm:$0xff]  }
 0x1b4   :  { %2356 = vmatprep.subr.bf16.mxu0 %v3655_v9  ;;  %v3749_v9 = vld [vmem:[%s5670_s3 + $0x544] ss:$24 sps:$4 sm:$0xff]  }
 0x1b7   :  { %2357 = vmatpush1.bf16.msra.mxu0 %v3653_v1  ;;  %v3752_v1 = vld [vmem:[%s5670_s3 + $0x54c] ss:$24 sps:$4 sm:$0xff]  }
 0x1b8   :  { %2358 = vmatprep.subr.bf16.mxu0 %v3661_v11  ;;  %v3747_v11 = vld [vmem:[%s5670_s3 + $0x540] ss:$24 sps:$4 sm:$0xff]  }
 0x1bb   :  { %2359 = vmatpush1.bf16.msra.mxu0 %v3659_v12  ;;  %v3750_v12 = vld [vmem:[%s5670_s3 + $0x548] ss:$24 sps:$4 sm:$0xff]  }
 0x1bc   :  { %2360 = vmatprep.subr.bf16.mxu0 %v3667_v13  ;;  %v3755_v13 = vld [vmem:[%s5670_s3 + $0x574] ss:$24 sps:$4 sm:$0xff]  }
 0x1bf   :  { %2361 = vmatpush1.bf16.msra.mxu0 %v3665_v14  ;;  %v3758_v14 = vld [vmem:[%s5670_s3 + $0x57c] ss:$24 sps:$4 sm:$0xff]  }
 0x1c0   :  { %2362 = vmatprep.subr.bf16.mxu0 %v3673_v15  ;;  %v3753_v15 = vld [vmem:[%s5670_s3 + $0x570] ss:$24 sps:$4 sm:$0xff]  }
 0x1c3   :  { %2363 = vmatpush1.bf16.msra.mxu0 %v3671_v16  ;;  %v3756_v16 = vld [vmem:[%s5670_s3 + $0x578] ss:$24 sps:$4 sm:$0xff]  }
 0x1c4   :  { %2373 = vmatprep.subr.bf16.mxu0 %v3680_v17  ;;  %v3761_v17 = vld [vmem:[%s5670_s3 + $0x5a4] ss:$24 sps:$4 sm:$0xff]  }
 0x219   :  { %v296_v18 = vpop.f32.mrb[0].mxu0 }
 0x21a   :  { %v298_v10 = vpop.f32.mrb[1].mxu0  ;;  %v4652_v23 = vpack.c.bf16 %v296_v18, %v296_v18  ;;  %v3764_v18 = vld [vmem:[%s5670_s3 + $0x5ac] ss:$24 sps:$4 sm:$0xff]  }
 0x21b   :  { %v4644_v19 = vpack.c.bf16 %v298_v10, %v298_v10  ;;  %v3759_v10 = vld [vmem:[%s5670_s3 + $0x5a0] ss:$24 sps:$4 sm:$0xff]  }
 0x21d   :  { %2241 = vmatprep.mubr.bf16.mxu1 %v4644_v19  ;;  %2364 = vmatprep.mubr.bf16.mxu0 %v4644_v19 }
 0x21e   :  { %2242 = vmatmul.mubr.bf16.vlgmr.msra.gmra.mrb[0].mxu1 %v4652_v23  ;;  %2365 = vmatmul.mubr.bf16.vlgmr.msra.gmra.mrb[8].mxu0 %v4652_v23 }
 0x21f   :  { %2251 = vmatpush1.bf16.msra.mxu1 %v3675_v21  ;;  %2374 = vmatpush1.bf16.msra.mxu0 %v3678_v22  ;;  %v3762_v21 = vld [vmem:[%s5670_s3 + $0x5a8] ss:$24 sps:$4 sm:$0xff]   ;;  %v3767_v22 = vld [vmem:[%s5670_s3 + $0x5d4] ss:$24 sps:$4 sm:$0xff]  }
 0x220   :  { %2252 = vmatprep.subr.bf16.mxu1 %v3683_v24  ;;  %2375 = vmatprep.subr.bf16.mxu0 %v3686_v25  ;;  %v3770_v24 = vld [vmem:[%s5670_s3 + $0x5dc] ss:$24 sps:$4 sm:$0xff]   ;;  %v3765_v25 = vld [vmem:[%s5670_s3 + $0x5d0] ss:$24 sps:$4 sm:$0xff]  }
 0x223   :  { %2253 = vmatpush1.bf16.msra.mxu1 %v3681_v26  ;;  %2376 = vmatpush1.bf16.msra.mxu0 %v3684_v27  ;;  %v3768_v26 = vld [vmem:[%s5670_s3 + $0x5d8] ss:$24 sps:$4 sm:$0xff]   ;;  %v3773_v27 = vld [vmem:[%s5670_s3 + $0x604] ss:$24 sps:$4 sm:$0xff]  }
 0x224   :  { %2254 = vmatprep.subr.bf16.mxu1 %v3689_v28  ;;  %2377 = vmatprep.subr.bf16.mxu0 %v3692_v30  ;;  %v3776_v28 = vld [vmem:[%s5670_s3 + $0x60c] ss:$24 sps:$4 sm:$0xff]  }
 0x227   :  { %2255 = vmatpush1.bf16.msra.mxu1 %v3687_v31  ;;  %2378 = vmatpush1.bf16.msra.mxu0 %v3690_v32  ;;  %v3771_v32 = vld [vmem:[%s5670_s3 + $0x600] ss:$24 sps:$4 sm:$0xff]  }
 0x228   :  { %2256 = vmatprep.subr.bf16.mxu1 %v3695_v34  ;;  %2379 = vmatprep.subr.bf16.mxu0 %v3698_v35  ;;  %v3774_v35 = vld [vmem:[%s5670_s3 + $0x608] ss:$24 sps:$4 sm:$0xff]  }
 0x22b   :  { %2257 = vmatpush1.bf16.msra.mxu1 %v3693_v36  ;;  %2380 = vmatpush1.bf16.msra.mxu0 %v3696_v37  ;;  %v3779_v37 = vld [vmem:[%s5670_s3 + $0x634] ss:$24 sps:$4 sm:$0xff]  }
 0x22c   :  { %2258 = vmatprep.subr.bf16.mxu1 %v3701_v38  ;;  %2381 = vmatprep.subr.bf16.mxu0 %v3704_v39  ;;  %v3782_v38 = vld [vmem:[%s5670_s3 + $0x63c] ss:$24 sps:$4 sm:$0xff]   ;;  %v3777_v39 = vld [vmem:[%s5670_s3 + $0x630] ss:$24 sps:$4 sm:$0xff]  }
 0x22f   :  { %2259 = vmatpush1.bf16.msra.mxu1 %v3699_v40  ;;  %2382 = vmatpush1.bf16.msra.mxu0 %v3702_v41  ;;  %v3780_v40 = vld [vmem:[%s5670_s3 + $0x638] ss:$24 sps:$4 sm:$0xff]   ;;  %v3785_v41 = vld [vmem:[%s5670_s3 + $0x664] ss:$24 sps:$4 sm:$0xff]  }
 0x230   :  { %2260 = vmatprep.subr.bf16.mxu1 %v3707_v42  ;;  %2383 = vmatprep.subr.bf16.mxu0 %v3710_v43  ;;  %v3788_v42 = vld [vmem:[%s5670_s3 + $0x66c] ss:$24 sps:$4 sm:$0xff]   ;;  %v3783_v43 = vld [vmem:[%s5670_s3 + $0x660] ss:$24 sps:$4 sm:$0xff]  }
 0x233   :  { %2261 = vmatpush1.bf16.msra.mxu1 %v3705_v44  ;;  %2384 = vmatpush1.bf16.msra.mxu0 %v3708_v45  ;;  %v3786_v44 = vld [vmem:[%s5670_s3 + $0x668] ss:$24 sps:$4 sm:$0xff]   ;;  %v3791_v45 = vld [vmem:[%s5670_s3 + $0x694] ss:$24 sps:$4 sm:$0xff]  }
 0x234   :  { %2262 = vmatprep.subr.bf16.mxu1 %v3713_v46  ;;  %2385 = vmatprep.subr.bf16.mxu0 %v3716_v47  ;;  %v3794_v46 = vld [vmem:[%s5670_s3 + $0x69c] ss:$24 sps:$4 sm:$0xff]   ;;  %v3789_v47 = vld [vmem:[%s5670_s3 + $0x690] ss:$24 sps:$4 sm:$0xff]  }
 0x237   :  { %2263 = vmatpush1.bf16.msra.mxu1 %v3711_v48  ;;  %2386 = vmatpush1.bf16.msra.mxu0 %v3714_v49  ;;  %v3792_v48 = vld [vmem:[%s5670_s3 + $0x698] ss:$24 sps:$4 sm:$0xff]   ;;  %v3797_v49 = vld [vmem:[%s5670_s3 + $0x6c4] ss:$24 sps:$4 sm:$0xff]  }
 0x238   :  { %2264 = vmatprep.subr.bf16.mxu1 %v3719_v50  ;;  %2387 = vmatprep.subr.bf16.mxu0 %v3722_v51  ;;  %v3800_v50 = vld [vmem:[%s5670_s3 + $0x6cc] ss:$24 sps:$4 sm:$0xff]   ;;  %v3795_v51 = vld [vmem:[%s5670_s3 + $0x6c0] ss:$24 sps:$4 sm:$0xff]  }
 0x239   :  { %v4748_v55 = vpop.f32.mrb[2].mxu0 }
 0x23a   :  { %v369_v56 = vpop.f32.mrb[3].mxu0  ;;  %v4857_v34 = vpack.c.bf16 %v4748_v55, %v4748_v55  ;;  %v3804_v55 = vld [vmem:[%s5670_s3 + $0x6f8] ss:$24 sps:$4 sm:$0xff]  }
 0x23b   :  { %v4750_v57 = vpack.c.bf16 %v369_v56, %v369_v56  ;;  %2265 = vmatpush1.bf16.msra.mxu1 %v3717_v20  ;;  %2388 = vmatpush1.bf16.msra.mxu0 %v3720_v52  ;;  %v3798_v20 = vld [vmem:[%s5670_s3 + $0x6c8] ss:$24 sps:$4 sm:$0xff]   ;;  %v3803_v52 = vld [vmem:[%s5670_s3 + $0x6f4] ss:$24 sps:$4 sm:$0xff]   ;;  %v3809_v56 = vld [vmem:[%s5670_s3 + $0x724] ss:$24 sps:$4 sm:$0xff]  }
 0x23c   :  { %2266 = vmatprep.subr.bf16.mxu1 %v3725_v53  ;;  %2389 = vmatprep.subr.bf16.mxu0 %v3728_v54  ;;  %v3806_v53 = vld [vmem:[%s5670_s3 + $0x6fc] ss:$24 sps:$4 sm:$0xff]   ;;  %v3801_v54 = vld [vmem:[%s5670_s3 + $0x6f0] ss:$24 sps:$4 sm:$0xff]  }
 0x23d   :  { %2282 = vmatprep.mubr.bf16.mxu1 %v4750_v57  ;;  %2405 = vmatprep.mubr.bf16.mxu0 %v4750_v57 }
 0x23f   :  { %2267 = vmatpush1.bf16.msra.mxu1 %v3723_v58  ;;  %2390 = vmatpush1.bf16.msra.mxu0 %v3726_v59  ;;  %v3812_v58 = vld [vmem:[%s5670_s3 + $0x72c] ss:$24 sps:$4 sm:$0xff]   ;;  %v3807_v59 = vld [vmem:[%s5670_s3 + $0x720] ss:$24 sps:$4 sm:$0xff]  }
 0x240   :  { %2268 = vmatprep.subr.bf16.mxu1 %v3731_v60  ;;  %2391 = vmatprep.subr.bf16.mxu0 %v3734_v61  ;;  %v3810_v60 = vld [vmem:[%s5670_s3 + $0x728] ss:$24 sps:$4 sm:$0xff]   ;;  %v3815_v61 = vld [vmem:[%s5670_s3 + $0x754] ss:$24 sps:$4 sm:$0xff]  }
 0x243   :  { %2269 = vmatpush1.bf16.msra.mxu1 %v3729_v62  ;;  %2392 = vmatpush1.bf16.msra.mxu0 %v3732_v63  ;;  %v3818_v62 = vld [vmem:[%s5670_s3 + $0x75c] ss:$24 sps:$4 sm:$0xff]   ;;  %v3813_v63 = vld [vmem:[%s5670_s3 + $0x750] ss:$24 sps:$4 sm:$0xff]  }
 0x244   :  { %2270 = vmatprep.subr.bf16.mxu1 %v3737_v0  ;;  %2393 = vmatprep.subr.bf16.mxu0 %v3740_v2  ;;  %v3816_v0 = vld [vmem:[%s5670_s3 + $0x758] ss:$24 sps:$4 sm:$0xff]   ;;  %v3821_v2 = vld [vmem:[%s5670_s3 + $0x784] ss:$24 sps:$4 sm:$0xff]  }
 0x247   :  { %2271 = vmatpush1.bf16.msra.mxu1 %v3735_v3  ;;  %2394 = vmatpush1.bf16.msra.mxu0 %v3738_v4  ;;  %v3824_v3 = vld [vmem:[%s5670_s3 + $0x78c] ss:$24 sps:$4 sm:$0xff]   ;;  %v3819_v4 = vld [vmem:[%s5670_s3 + $0x780] ss:$24 sps:$4 sm:$0xff]  }
 0x248   :  { %2272 = vmatprep.subr.bf16.mxu1 %v3743_v5  ;;  %2395 = vmatprep.subr.bf16.mxu0 %v3746_v6  ;;  %v3822_v5 = vld [vmem:[%s5670_s3 + $0x788] ss:$24 sps:$4 sm:$0xff]   ;;  %v3827_v6 = vld [vmem:[%s5670_s3 + $0x7b4] ss:$24 sps:$4 sm:$0xff]  }
 0x24b   :  { %2273 = vmatpush1.bf16.msra.mxu1 %v3741_v7  ;;  %2396 = vmatpush1.bf16.msra.mxu0 %v3744_v8  ;;  %v3830_v7 = vld [vmem:[%s5670_s3 + $0x7bc] ss:$24 sps:$4 sm:$0xff]   ;;  %v3825_v8 = vld [vmem:[%s5670_s3 + $0x7b0] ss:$24 sps:$4 sm:$0xff]  }
 0x24c   :  { %2274 = vmatprep.subr.bf16.mxu1 %v3749_v9  ;;  %2397 = vmatprep.subr.bf16.mxu0 %v3752_v1  ;;  %v3828_v9 = vld [vmem:[%s5670_s3 + $0x7b8] ss:$24 sps:$4 sm:$0xff]   ;;  %v3833_v1 = vld [vmem:[%s5670_s3 + $0x7e4] ss:$24 sps:$4 sm:$0xff]  }
 0x24f   :  { %2275 = vmatpush1.bf16.msra.mxu1 %v3747_v11  ;;  %2398 = vmatpush1.bf16.msra.mxu0 %v3750_v12  ;;  %v3836_v11 = vld [vmem:[%s5670_s3 + $0x7ec] ss:$24 sps:$4 sm:$0xff]   ;;  %v3831_v12 = vld [vmem:[%s5670_s3 + $0x7e0] ss:$24 sps:$4 sm:$0xff]  }
 0x250   :  { %2276 = vmatprep.subr.bf16.mxu1 %v3755_v13  ;;  %2399 = vmatprep.subr.bf16.mxu0 %v3758_v14  ;;  %v3834_v13 = vld [vmem:[%s5670_s3 + $0x7e8] ss:$24 sps:$4 sm:$0xff]   ;;  %v3839_v14 = vld [vmem:[%s5670_s3 + $0x814] ss:$24 sps:$4 sm:$0xff]  }
 0x253   :  { %2277 = vmatpush1.bf16.msra.mxu1 %v3753_v15  ;;  %2400 = vmatpush1.bf16.msra.mxu0 %v3756_v16  ;;  %v3842_v15 = vld [vmem:[%s5670_s3 + $0x81c] ss:$24 sps:$4 sm:$0xff]   ;;  %v3837_v16 = vld [vmem:[%s5670_s3 + $0x810] ss:$24 sps:$4 sm:$0xff]  }
 0x254   :  { %2278 = vmatprep.subr.bf16.mxu1 %v3761_v17  ;;  %2401 = vmatprep.subr.bf16.mxu0 %v3764_v18  ;;  %v3840_v17 = vld [vmem:[%s5670_s3 + $0x818] ss:$24 sps:$4 sm:$0xff]   ;;  %v3845_v18 = vld [vmem:[%s5670_s3 + $0x844] ss:$24 sps:$4 sm:$0xff]  }
 0x257   :  { %2279 = vmatpush1.bf16.msra.mxu1 %v3759_v10  ;;  %2402 = vmatpush1.bf16.msra.mxu0 %v3762_v21  ;;  %v3848_v10 = vld [vmem:[%s5670_s3 + $0x84c] ss:$24 sps:$4 sm:$0xff]   ;;  %v3843_v21 = vld [vmem:[%s5670_s3 + $0x840] ss:$24 sps:$4 sm:$0xff]  }
 0x258   :  { %2280 = vmatprep.subr.bf16.mxu1 %v3767_v22  ;;  %2403 = vmatprep.subr.bf16.mxu0 %v3770_v24  ;;  %v3846_v22 = vld [vmem:[%s5670_s3 + $0x848] ss:$24 sps:$4 sm:$0xff]   ;;  %v3851_v24 = vld [vmem:[%s5670_s3 + $0x874] ss:$24 sps:$4 sm:$0xff]  }
 0x259   :  { %v4850_v30 = vpop.f32.mrb[4].mxu0 }
 0x25a   :  { %v440_v31 = vpop.f32.mrb[5].mxu0 }
 0x25b   :  { %2281 = vmatpush1.bf16.msra.mxu1 %v3765_v25  ;;  %2404 = vmatpush1.bf16.msra.mxu0 %v3768_v26  ;;  %v4862_v36 = vpack.c.bf16 %v440_v31, %v440_v31  ;;  %v3854_v25 = vld [vmem:[%s5670_s3 + $0x87c] ss:$24 sps:$4 sm:$0xff]   ;;  %v3849_v26 = vld [vmem:[%s5670_s3 + $0x870] ss:$24 sps:$4 sm:$0xff]   ;;  %v3860_v31 = vld [vmem:[%s5670_s3 + $0x8ac] ss:$24 sps:$4 sm:$0xff]  }
 0x25c   :  { %2291 = vmatprep.subr.bf16.mxu1 %v3773_v27  ;;  %2414 = vmatprep.subr.bf16.mxu0 %v3776_v28  ;;  %v3852_v27 = vld [vmem:[%s5670_s3 + $0x878] ss:$24 sps:$4 sm:$0xff]   ;;  %v3857_v28 = vld [vmem:[%s5670_s3 + $0x8a4] ss:$24 sps:$4 sm:$0xff]  }
 0x25e   :  { %2283 = vmatmul.mubr.bf16.vlgmr.msra.gmra.mrb[0].mxu1 %v4857_v34  ;;  %2406 = vmatmul.mubr.bf16.vlgmr.msra.gmra.mrb[8].mxu0 %v4857_v34 }
 0x25f   :  { %2292 = vmatpush1.bf16.msra.mxu1 %v3771_v32  ;;  %2323 = vmatprep.mubr.bf16.mxu1 %v4862_v36  ;;  %v3855_v32 = vld [vmem:[%s5670_s3 + $0x8a0] ss:$24 sps:$4 sm:$0xff]  }
 0x260   :  { %2415 = vmatpush1.bf16.msra.mxu0 %v3774_v35  ;;  %2446 = vmatprep.mubr.bf16.mxu0 %v4862_v36  ;;  %v3858_v35 = vld [vmem:[%s5670_s3 + $0x8a8] ss:$24 sps:$4 sm:$0xff]  }
 0x261   :  { %2293 = vmatprep.subr.bf16.mxu1 %v3779_v37  ;;  %2416 = vmatprep.subr.bf16.mxu0 %v3782_v38  ;;  %v3863_v37 = vld [vmem:[%s5670_s3 + $0x8d4] ss:$24 sps:$4 sm:$0xff]  }
 0x262   :  { %v3866_v38 = vld [vmem:[%s5670_s3 + $0x8dc] ss:$24 sps:$4 sm:$0xff]  }
 0x263   :  { %2294 = vmatpush1.bf16.msra.mxu1 %v3777_v39  ;;  %v3861_v39 = vld [vmem:[%s5670_s3 + $0x8d0] ss:$24 sps:$4 sm:$0xff]  }
 0x264   :  { %2417 = vmatpush1.bf16.msra.mxu0 %v3780_v40  ;;  %2295 = vmatprep.subr.bf16.mxu1 %v3785_v41  ;;  %v3864_v40 = vld [vmem:[%s5670_s3 + $0x8d8] ss:$24 sps:$4 sm:$0xff]   ;;  %v3869_v41 = vld [vmem:[%s5670_s3 + $0x14] ss:$24 sps:$4 sm:$0xff]  }
 0x265   :  { %2418 = vmatprep.subr.bf16.mxu0 %v3788_v42  ;;  %v3867_v42 = vld [vmem:[%s5670_s3 + $0x10] ss:$24 sps:$4 sm:$0xff]  }
 0x267   :  { %2296 = vmatpush1.bf16.msra.mxu1 %v3783_v43  ;;  %v5056_v43 = vpack.c.bf16 %v4850_v30, %v4850_v30  ;;  %v3875_v30 = vld [vmem:[%s5670_s3 + $0x74] ss:$24 sps:$4 sm:$0xff]  }
 0x268   :  { %2419 = vmatpush1.bf16.msra.mxu0 %v3786_v44  ;;  %2297 = vmatprep.subr.bf16.mxu1 %v3791_v45  ;;  %v3872_v44 = vld [vmem:[%s5670_s3 + $0x44] ss:$24 sps:$4 sm:$0xff]   ;;  %v3870_v45 = vld [vmem:[%s5670_s3 + $0x40] ss:$24 sps:$4 sm:$0xff]  }
 0x269   :  { %2420 = vmatprep.subr.bf16.mxu0 %v3794_v46  ;;  %v3873_v46 = vld [vmem:[%s5670_s3 + $0x70] ss:$24 sps:$4 sm:$0xff]  }
 0x26b   :  { %2298 = vmatpush1.bf16.msra.mxu1 %v3789_v47  ;;  %v3878_v47 = vld [vmem:[%s5670_s3 + $0xa4] ss:$24 sps:$4 sm:$0xff]  }
 0x26c   :  { %2421 = vmatpush1.bf16.msra.mxu0 %v3792_v48  ;;  %2299 = vmatprep.subr.bf16.mxu1 %v3797_v49  ;;  %v3881_v48 = vld [vmem:[%s5670_s3 + $0xd4] ss:$24 sps:$4 sm:$0xff]   ;;  %v3879_v49 = vld [vmem:[%s5670_s3 + $0xd0] ss:$24 sps:$4 sm:$0xff]  }
 0x26d   :  { %2422 = vmatprep.subr.bf16.mxu0 %v3800_v50  ;;  %v3884_v50 = vld [vmem:[%s5670_s3 + $0x104] ss:$24 sps:$4 sm:$0xff]  }
 0x26f   :  { %2300 = vmatpush1.bf16.msra.mxu1 %v3795_v51  ;;  %v3882_v51 = vld [vmem:[%s5670_s3 + $0x100] ss:$24 sps:$4 sm:$0xff]  }
 0x270   :  { %2423 = vmatpush1.bf16.msra.mxu0 %v3798_v20  ;;  %2301 = vmatprep.subr.bf16.mxu1 %v3803_v52  ;;  %v3887_v20 = vld [vmem:[%s5670_s3 + $0x134] ss:$24 sps:$4 sm:$0xff]   ;;  %v3885_v52 = vld [vmem:[%s5670_s3 + $0x130] ss:$24 sps:$4 sm:$0xff]  }
 0x271   :  { %2424 = vmatprep.subr.bf16.mxu0 %v3806_v53  ;;  %v3890_v53 = vld [vmem:[%s5670_s3 + $0x164] ss:$24 sps:$4 sm:$0xff]  }
 0x273   :  { %2302 = vmatpush1.bf16.msra.mxu1 %v3801_v54  ;;  %v3888_v54 = vld [vmem:[%s5670_s3 + $0x160] ss:$24 sps:$4 sm:$0xff]  }
 0x274   :  { %2425 = vmatpush1.bf16.msra.mxu0 %v3804_v55  ;;  %2303 = vmatprep.subr.bf16.mxu1 %v3809_v56  ;;  %v3893_v55 = vld [vmem:[%s5670_s3 + $0x194] ss:$24 sps:$4 sm:$0xff]   ;;  %v3891_v56 = vld [vmem:[%s5670_s3 + $0x190] ss:$24 sps:$4 sm:$0xff]  }
 0x275   :  { %2426 = vmatprep.subr.bf16.mxu0 %v3812_v58  ;;  %v3896_v58 = vld [vmem:[%s5670_s3 + $0x1c4] ss:$24 sps:$4 sm:$0xff]  }
 0x277   :  { %2304 = vmatpush1.bf16.msra.mxu1 %v3807_v59  ;;  %v3894_v59 = vld [vmem:[%s5670_s3 + $0x1c0] ss:$24 sps:$4 sm:$0xff]  }
 0x278   :  { %2427 = vmatpush1.bf16.msra.mxu0 %v3810_v60  ;;  %2305 = vmatprep.subr.bf16.mxu1 %v3815_v61  ;;  %v3899_v60 = vld [vmem:[%s5670_s3 + $0x1f4] ss:$24 sps:$4 sm:$0xff]   ;;  %v3897_v61 = vld [vmem:[%s5670_s3 + $0x1f0] ss:$24 sps:$4 sm:$0xff]  }
 0x279   :  { %2428 = vmatprep.subr.bf16.mxu0 %v3818_v62  ;;  %v3902_v62 = vld [vmem:[%s5670_s3 + $0x224] ss:$24 sps:$4 sm:$0xff]  }
 0x27b   :  { %2306 = vmatpush1.bf16.msra.mxu1 %v3813_v63  ;;  %v3900_v63 = vld [vmem:[%s5670_s3 + $0x220] ss:$24 sps:$4 sm:$0xff]  }
 0x27c   :  { %2429 = vmatpush1.bf16.msra.mxu0 %v3816_v0  ;;  %2307 = vmatprep.subr.bf16.mxu1 %v3821_v2  ;;  %v3905_v0 = vld [vmem:[%s5670_s3 + $0x254] ss:$24 sps:$4 sm:$0xff]   ;;  %v3903_v2 = vld [vmem:[%s5670_s3 + $0x250] ss:$24 sps:$4 sm:$0xff]  }
 0x27d   :  { %2430 = vmatprep.subr.bf16.mxu0 %v3824_v3  ;;  %v3908_v3 = vld [vmem:[%s5670_s3 + $0x284] ss:$24 sps:$4 sm:$0xff]  }
 0x27f   :  { %2308 = vmatpush1.bf16.msra.mxu1 %v3819_v4  ;;  %v3906_v4 = vld [vmem:[%s5670_s3 + $0x280] ss:$24 sps:$4 sm:$0xff]  }
 0x280   :  { %2431 = vmatpush1.bf16.msra.mxu0 %v3822_v5  ;;  %2309 = vmatprep.subr.bf16.mxu1 %v3827_v6  ;;  %v3911_v5 = vld [vmem:[%s5670_s3 + $0x2b4] ss:$24 sps:$4 sm:$0xff]   ;;  %v3909_v6 = vld [vmem:[%s5670_s3 + $0x2b0] ss:$24 sps:$4 sm:$0xff]  }
 0x281   :  { %2432 = vmatprep.subr.bf16.mxu0 %v3830_v7  ;;  %v3914_v7 = vld [vmem:[%s5670_s3 + $0x2e4] ss:$24 sps:$4 sm:$0xff]  }
 0x283   :  { %2310 = vmatpush1.bf16.msra.mxu1 %v3825_v8  ;;  %v3912_v8 = vld [vmem:[%s5670_s3 + $0x2e0] ss:$24 sps:$4 sm:$0xff]  }
 0x284   :  { %2433 = vmatpush1.bf16.msra.mxu0 %v3828_v9  ;;  %2311 = vmatprep.subr.bf16.mxu1 %v3833_v1  ;;  %v3917_v9 = vld [vmem:[%s5670_s3 + $0x314] ss:$24 sps:$4 sm:$0xff]   ;;  %v3915_v1 = vld [vmem:[%s5670_s3 + $0x310] ss:$24 sps:$4 sm:$0xff]  }
 0x285   :  { %2434 = vmatprep.subr.bf16.mxu0 %v3836_v11  ;;  %v3920_v11 = vld [vmem:[%s5670_s3 + $0x344] ss:$24 sps:$4 sm:$0xff]  }
 0x287   :  { %2312 = vmatpush1.bf16.msra.mxu1 %v3831_v12  ;;  %v3918_v12 = vld [vmem:[%s5670_s3 + $0x340] ss:$24 sps:$4 sm:$0xff]  }
 0x288   :  { %2435 = vmatpush1.bf16.msra.mxu0 %v3834_v13  ;;  %2313 = vmatprep.subr.bf16.mxu1 %v3839_v14  ;;  %v3923_v13 = vld [vmem:[%s5670_s3 + $0x374] ss:$24 sps:$4 sm:$0xff]   ;;  %v2600_v14 = vld [vmem:[%s5671_s5 + $0x80] sm:$0xff] }
 0x289   :  { %2436 = vmatprep.subr.bf16.mxu0 %v3842_v15  ;;  %v2601_v15 = vld [vmem:[%s5671_s5 + $0x88] sm:$0xff] }
 0x28b   :  { %2314 = vmatpush1.bf16.msra.mxu1 %v3837_v16  ;;  %v2584_v16 = vld [vmem:[%s5671_s5] sm:$0xff] }
 0x28c   :  { %2437 = vmatpush1.bf16.msra.mxu0 %v3840_v17  ;;  %2315 = vmatprep.subr.bf16.mxu1 %v3845_v18  ;;  %v2585_v17 = vld [vmem:[%s5671_s5 + $0x8] sm:$0xff]  ;;  %v2602_v18 = vld [vmem:[%s5671_s5 + $0x90] sm:$0xff] }
 0x28d   :  { %2438 = vmatprep.subr.bf16.mxu0 %v3848_v10  ;;  %v2603_v10 = vld [vmem:[%s5671_s5 + $0x98] sm:$0xff] }
 0x28f   :  { %2316 = vmatpush1.bf16.msra.mxu1 %v3843_v21  ;;  %v3428_v21 = vpack.c.bf16 %v2585_v17, %v2584_v16  ;;  %v3944_v16 = vld [vmem:[%s5670_s3 + $0x4c4] ss:$24 sps:$4 sm:$0xff]  }
 0x290   :  { %2439 = vmatpush1.bf16.msra.mxu0 %v3846_v22  ;;  %2317 = vmatprep.subr.bf16.mxu1 %v3851_v24  ;;  %v3430_v22 = vpack.c.bf16 %v2603_v10, %v2602_v18  ;;  %v2587_v24 = vld [vmem:[%s5671_s5 + $0x18] sm:$0xff]  ;;  %v2632_v17 = vld [vmem:[%s5671_s5 + $0x180] sm:$0xff]  ;;  %v2633_v18 = vld [vmem:[%s5671_s5 + $0x188] sm:$0xff] }
 0x291   :  { %2440 = vmatprep.subr.bf16.mxu0 %v3854_v25  ;;  %v2604_v25 = vld [vmem:[%s5671_s5 + $0xa0] sm:$0xff]  ;;  %v3947_v10 = vld [vmem:[%s5670_s3 + $0x4f4] ss:$24 sps:$4 sm:$0xff]  }
 0x293   :  { %2318 = vmatpush1.bf16.msra.mxu1 %v3849_v26  ;;  %v2605_v26 = vld [vmem:[%s5671_s5 + $0xa8] sm:$0xff] }
 0x294   :  { %2441 = vmatpush1.bf16.msra.mxu0 %v3852_v27  ;;  %2319 = vmatprep.subr.bf16.mxu1 %v3857_v28  ;;  %v3921_v28 = vld [vmem:[%s5670_s3 + $0x370] ss:$24 sps:$4 sm:$0xff]  }
 0x295   :  { %2442 = vmatprep.subr.bf16.mxu0 %v3860_v31  ;;  %v3434_v31 = vpack.c.bf16 %v2605_v26, %v2604_v25  ;;  %v3953_v25 = vld [vmem:[%s5670_s3 + $0x554] ss:$24 sps:$4 sm:$0xff]   ;;  %v3951_v26 = vld [vmem:[%s5670_s3 + $0x550] ss:$24 sps:$4 sm:$0xff]  }
 0x297   :  { %2320 = vmatpush1.bf16.msra.mxu1 %v3855_v32  ;;  %v2588_v32 = vld [vmem:[%s5671_s5 + $0x20] sm:$0xff] }
 0x298   :  { %2443 = vmatpush1.bf16.msra.mxu0 %v3858_v35  ;;  %2321 = vmatprep.subr.bf16.mxu1 %v3863_v37  ;;  %v2589_v35 = vld [vmem:[%s5671_s5 + $0x28] sm:$0xff]  ;;  %v3926_v37 = vld [vmem:[%s5670_s3 + $0x3a4] ss:$24 sps:$4 sm:$0xff]  }
 0x299   :  { %2444 = vmatprep.subr.bf16.mxu0 %v3866_v38  ;;  %v2606_v38 = vld [vmem:[%s5671_s5 + $0xb0] sm:$0xff] }
 0x29b   :  { %2322 = vmatpush1.bf16.msra.mxu1 %v3861_v39  ;;  %v2607_v39 = vld [vmem:[%s5671_s5 + $0xb8] sm:$0xff] }
 0x29c   :  { %2445 = vmatpush1.bf16.msra.mxu0 %v3864_v40  ;;  %2455 = vmatprep.subr.bf16.mxu1 %v3869_v41  ;;  %v3436_v40 = vpack.c.bf16 %v2589_v35, %v2588_v32  ;;  %v3924_v41 = vld [vmem:[%s5670_s3 + $0x3a0] ss:$24 sps:$4 sm:$0xff]   ;;  %v3957_v32 = vld [vmem:[%s5670_s3 + $0x5b0] ss:$24 sps:$4 sm:$0xff]   ;;  %v3962_v35 = vld [vmem:[%s5670_s3 + $0x5e4] ss:$24 sps:$4 sm:$0xff]  }
 0x29e   :  { %2324 = vmatmul.mubr.bf16.vlgmr.msra.gmra.mrb[0].mxu1 %v5056_v43 }
 0x29f   :  { %2447 = vmatmul.mubr.bf16.vlgmr.msra.gmra.mrb[8].mxu0 %v5056_v43  ;;  %2456 = vmatpush1.bf16.msra.mxu1 %v3867_v42  ;;  %v3438_v42 = vpack.c.bf16 %v2607_v39, %v2606_v38  ;;  %v3965_v38 = vld [vmem:[%s5670_s3 + $0x614] ss:$24 sps:$4 sm:$0xff]   ;;  %v3963_v39 = vld [vmem:[%s5670_s3 + $0x610] ss:$24 sps:$4 sm:$0xff]  }
 0x2a0   :  { %2487 = vmatprep.mubr.bf16.mxu1 %v4644_v19  ;;  %2457 = vmatprep.subr.bf16.mxu1 %v3872_v44  ;;  %v3876_v19 = vld [vmem:[%s5670_s3 + $0xa0] ss:$24 sps:$4 sm:$0xff]   ;;  %v2590_v44 = vld [vmem:[%s5671_s5 + $0x30] sm:$0xff] }
 0x2a3   :  { %2458 = vmatpush1.bf16.msra.mxu1 %v3870_v45  ;;  %v2591_v45 = vld [vmem:[%s5671_s5 + $0x38] sm:$0xff] }
 0x2a4   :  { %2459 = vmatprep.subr.bf16.mxu1 %v3875_v30  ;;  %v3929_v30 = vld [vmem:[%s5670_s3 + $0x3d4] ss:$24 sps:$4 sm:$0xff]  }
 0x2a7   :  { %2460 = vmatpush1.bf16.msra.mxu1 %v3873_v46  ;;  %v2608_v46 = vld [vmem:[%s5671_s5 + $0xc0] sm:$0xff] }
 0x2a8   :  { %2461 = vmatprep.subr.bf16.mxu1 %v3878_v47  ;;  %v2609_v47 = vld [vmem:[%s5671_s5 + $0xc8] sm:$0xff] }
 0x2ab   :  { %2462 = vmatpush1.bf16.msra.mxu1 %v3876_v19  ;;  %v3440_v19 = vpack.c.bf16 %v2591_v45, %v2590_v44  ;;  %v3969_v44 = vld [vmem:[%s5670_s3 + $0x670] ss:$24 sps:$4 sm:$0xff]   ;;  %v3977_v45 = vld [vmem:[%s5670_s3 + $0x6d4] ss:$24 sps:$4 sm:$0xff]  }
 0x2ac   :  { %2463 = vmatprep.subr.bf16.mxu1 %v3881_v48  ;;  %v3927_v48 = vld [vmem:[%s5670_s3 + $0x3d0] ss:$24 sps:$4 sm:$0xff]  }
 0x2af   :  { %2464 = vmatpush1.bf16.msra.mxu1 %v3879_v49  ;;  %v3442_v49 = vpack.c.bf16 %v2609_v47, %v2608_v46  ;;  %v3980_v46 = vld [vmem:[%s5670_s3 + $0x704] ss:$24 sps:$4 sm:$0xff]   ;;  %v3978_v47 = vld [vmem:[%s5670_s3 + $0x700] ss:$24 sps:$4 sm:$0xff]  }
 0x2b0   :  { %2465 = vmatprep.subr.bf16.mxu1 %v3884_v50  ;;  %v3932_v50 = vld [vmem:[%s5670_s3 + $0x404] ss:$24 sps:$4 sm:$0xff]  }
 0x2b3   :  { %2466 = vmatpush1.bf16.msra.mxu1 %v3882_v51  ;;  %v3930_v51 = vld [vmem:[%s5670_s3 + $0x400] ss:$24 sps:$4 sm:$0xff]  }
 0x2b4   :  { %2467 = vmatprep.subr.bf16.mxu1 %v3887_v20  ;;  %v2592_v20 = vld [vmem:[%s5671_s5 + $0x40] sm:$0xff] }
 0x2b7   :  { %2468 = vmatpush1.bf16.msra.mxu1 %v3885_v52  ;;  %v2593_v52 = vld [vmem:[%s5671_s5 + $0x48] sm:$0xff] }
 0x2b8   :  { %2469 = vmatprep.subr.bf16.mxu1 %v3890_v53  ;;  %v3935_v53 = vld [vmem:[%s5670_s3 + $0x434] ss:$24 sps:$4 sm:$0xff]  }
 0x2bb   :  { %2470 = vmatpush1.bf16.msra.mxu1 %v3888_v54  ;;  %v3444_v54 = vpack.c.bf16 %v2593_v52, %v2592_v20  ;;  %v3987_v20 = vld [vmem:[%s5670_s3 + $0x790] ss:$24 sps:$4 sm:$0xff]   ;;  %v3992_v52 = vld [vmem:[%s5670_s3 + $0x7c4] ss:$24 sps:$4 sm:$0xff]  }
 0x2bc   :  { %2471 = vmatprep.subr.bf16.mxu1 %v3893_v55  ;;  %v3933_v55 = vld [vmem:[%s5670_s3 + $0x430] ss:$24 sps:$4 sm:$0xff]  }
 0x2bf   :  { %2472 = vmatpush1.bf16.msra.mxu1 %v3891_v56  ;;  %v2610_v56 = vld [vmem:[%s5671_s5 + $0xd0] sm:$0xff] }
 0x2c0   :  { %2473 = vmatprep.subr.bf16.mxu1 %v3896_v58  ;;  %v2611_v58 = vld [vmem:[%s5671_s5 + $0xd8] sm:$0xff] }
 0x2c3   :  { %2474 = vmatpush1.bf16.msra.mxu1 %v3894_v59  ;;  %v3938_v59 = vld [vmem:[%s5670_s3 + $0x464] ss:$24 sps:$4 sm:$0xff]  }
 0x2c4   :  { %2475 = vmatprep.subr.bf16.mxu1 %v3899_v60  ;;  %v3446_v60 = vpack.c.bf16 %v2611_v58, %v2610_v56  ;;  %v3998_v56 = vld [vmem:[%s5670_s3 + $0x824] ss:$24 sps:$4 sm:$0xff]   ;;  %v3996_v58 = vld [vmem:[%s5670_s3 + $0x820] ss:$24 sps:$4 sm:$0xff]  }
 0x2c7   :  { %2476 = vmatpush1.bf16.msra.mxu1 %v3897_v61  ;;  %v2594_v61 = vld [vmem:[%s5671_s5 + $0x50] sm:$0xff] }
 0x2c8   :  { %2477 = vmatprep.subr.bf16.mxu1 %v3902_v62  ;;  %v2595_v62 = vld [vmem:[%s5671_s5 + $0x58] sm:$0xff] }
 0x2cb   :  { %2478 = vmatpush1.bf16.msra.mxu1 %v3900_v63  ;;  %v3448_v63 = vpack.c.bf16 %v2595_v62, %v2594_v61  ;;  %v4004_v61 = vld [vmem:[%s5670_s3 + $0x884] ss:$24 sps:$4 sm:$0xff]   ;;  %v4002_v62 = vld [vmem:[%s5670_s3 + $0x880] ss:$24 sps:$4 sm:$0xff]  }
 0x2cc   :  { %2479 = vmatprep.subr.bf16.mxu1 %v3905_v0  ;;  %v3936_v0 = vld [vmem:[%s5670_s3 + $0x460] ss:$24 sps:$4 sm:$0xff]  }
 0x2cf   :  { %2480 = vmatpush1.bf16.msra.mxu1 %v3903_v2  ;;  %v3941_v2 = vld [vmem:[%s5670_s3 + $0x494] ss:$24 sps:$4 sm:$0xff]  }
 0x2d0   :  { %2481 = vmatprep.subr.bf16.mxu1 %v3908_v3  ;;  %v2612_v3 = vld [vmem:[%s5671_s5 + $0xe0] sm:$0xff] }
 0x2d3   :  { %2482 = vmatpush1.bf16.msra.mxu1 %v3906_v4  ;;  %v2613_v4 = vld [vmem:[%s5671_s5 + $0xe8] sm:$0xff] }
 0x2d4   :  { %2483 = vmatprep.subr.bf16.mxu1 %v3911_v5  ;;  %v2596_v5 = vld [vmem:[%s5671_s5 + $0x60] sm:$0xff] }
 0x2d7   :  { %2484 = vmatpush1.bf16.msra.mxu1 %v3909_v6  ;;  %v3450_v6 = vpack.c.bf16 %v2613_v4, %v2612_v3  ;;  %v4008_v3 = vld [vmem:[%s5670_s3 + $0x8e0] ss:$24 sps:$4 sm:$0xff]   ;;  %v5451_v4 = vshrl.u32 %v35_v29, 7 }
 0x2d8   :  { %2485 = vmatprep.subr.bf16.mxu1 %v3914_v7  ;;  %v2597_v7 = vld [vmem:[%s5671_s5 + $0x68] sm:$0xff] }
 0x2db   :  { %2486 = vmatpush1.bf16.msra.mxu1 %v3912_v8  ;;  %v2614_v8 = vld [vmem:[%s5671_s5 + $0xf0] sm:$0xff] }
 0x2dc   :  { %2496 = vmatprep.subr.bf16.mxu1 %v3917_v9  ;;  %v2615_v9 = vld [vmem:[%s5671_s5 + $0xf8] sm:$0xff] }
 0x2de   :  { %2488 = vmatmul.mubr.bf16.vlgmr.msra.gmra.mrb[4].mxu1 %v4652_v23  ;;  %v3426_v23 = vpack.c.bf16 %v2601_v15, %v2600_v14  ;;  %v3939_v14 = vld [vmem:[%s5670_s3 + $0x490] ss:$24 sps:$4 sm:$0xff]  }
 0x2df   :  { %2497 = vmatpush1.bf16.msra.mxu1 %v3915_v1  ;;  %2528 = vmatprep.mubr.bf16.mxu1 %v4750_v57  ;;  %v2586_v57 = vld [vmem:[%s5671_s5 + $0x10] sm:$0xff]  ;;  %v3452_v1 = vpack.c.bf16 %v2597_v7, %v2596_v5  ;;  %v741_v5 = vsub.s32 0, %v5451_v4  ;;  %v5458_v7 = vld [vmem:[%s5672_s4] sm:$0x3f] }
 0x2e0   :  { %2498 = vmatprep.subr.bf16.mxu1 %v3920_v11  ;;  %3427 = vmatprep.subr.bf16.mxu0 %v3426_v23  ;;  %v3432_v27 = vpack.c.bf16 %v2587_v24, %v2586_v57  ;;  %v3454_v11 = vpack.c.bf16 %v2615_v9, %v2614_v8  ;;  %v3942_v23 = vld [vmem:[%s5670_s3 + $0x4c0] ss:$24 sps:$4 sm:$0xff]   ;;  %v3950_v57 = vld [vmem:[%s5670_s3 + $0x524] ss:$24 sps:$4 sm:$0xff]   ;;  %v753_v8 = vsub.s32 3, %v5451_v4 }
 0x2e1   :  { %3429 = vmatpush3.bf16.msra.mxu0 %v3428_v21  ;;  %v3458_v21 = vpack.c.bf16 %v2633_v18, %v2632_v17  ;;  %v3948_v24 = vld [vmem:[%s5670_s3 + $0x520] ss:$24 sps:$4 sm:$0xff]   ;;  %v742_v9 = vrot.slane %v5458_v7, %v741_v5  ;;  %v2646_v5 = vld [vmem:[%s5671_s5 + $0x1f0] sm:$0xff] }
 0x2e2   :  { %3431 = vmatprep.subr.bf16.mxu0 %v3430_v22  ;;  %v3945_v22 = vld [vmem:[%s5670_s3 + $0x4f0] ss:$24 sps:$4 sm:$0xff]  }
 0x2e3   :  { %2499 = vmatpush1.bf16.msra.mxu1 %v3918_v12  ;;  %v2598_v12 = vld [vmem:[%s5671_s5 + $0x70] sm:$0xff] }
 0x2e4   :  { %2500 = vmatprep.subr.bf16.mxu1 %v3923_v13  ;;  %v2599_v13 = vld [vmem:[%s5671_s5 + $0x78] sm:$0xff] }
 0x2e5   :  { %3433 = vmatpush3.bf16.msra.mxu0 %v3432_v27  ;;  %v3456_v15 = vpack.c.bf16 %v2599_v13, %v2598_v12  ;;  %v3956_v27 = vld [vmem:[%s5670_s3 + $0x584] ss:$24 sps:$4 sm:$0xff]  }
 0x2e6   :  { %3435 = vmatprep.subr.bf16.mxu0 %v3434_v31  ;;  %v3959_v31 = vld [vmem:[%s5670_s3 + $0x5b4] ss:$24 sps:$4 sm:$0xff]  }
 0x2e7   :  { %2501 = vmatpush1.bf16.msra.mxu1 %v3921_v28  ;;  %v3954_v28 = vld [vmem:[%s5670_s3 + $0x580] ss:$24 sps:$4 sm:$0xff]  }
 0x2e8   :  { %2502 = vmatprep.subr.bf16.mxu1 %v3926_v37  ;;  %v3960_v37 = vld [vmem:[%s5670_s3 + $0x5e0] ss:$24 sps:$4 sm:$0xff]  }
 0x2e9   :  { %3437 = vmatpush3.bf16.msra.mxu0 %v3436_v40  ;;  %v3968_v40 = vld [vmem:[%s5670_s3 + $0x644] ss:$24 sps:$4 sm:$0xff]  }
 0x2ea   :  { %3439 = vmatprep.subr.bf16.mxu0 %v3438_v42  ;;  %v3971_v42 = vld [vmem:[%s5670_s3 + $0x674] ss:$24 sps:$4 sm:$0xff]  }
 0x2eb   :  { %2503 = vmatpush1.bf16.msra.mxu1 %v3924_v41  ;;  %v3966_v41 = vld [vmem:[%s5670_s3 + $0x640] ss:$24 sps:$4 sm:$0xff]  }
 0x2ec   :  { %2504 = vmatprep.subr.bf16.mxu1 %v3929_v30  ;;  %v3975_v30 = vld [vmem:[%s5670_s3 + $0x6d0] ss:$24 sps:$4 sm:$0xff]  }
 0x2ed   :  { %3441 = vmatpush3.bf16.msra.mxu0 %v3440_v19  ;;  %v3983_v19 = vld [vmem:[%s5670_s3 + $0x734] ss:$24 sps:$4 sm:$0xff]  }
 0x2ee   :  { %3443 = vmatprep.subr.bf16.mxu0 %v3442_v49  ;;  %v3986_v49 = vld [vmem:[%s5670_s3 + $0x764] ss:$24 sps:$4 sm:$0xff]  }
 0x2ef   :  { %2505 = vmatpush1.bf16.msra.mxu1 %v3927_v48  ;;  %v3981_v48 = vld [vmem:[%s5670_s3 + $0x730] ss:$24 sps:$4 sm:$0xff]  }
 0x2f0   :  { %2506 = vmatprep.subr.bf16.mxu1 %v3932_v50  ;;  %v3984_v50 = vld [vmem:[%s5670_s3 + $0x760] ss:$24 sps:$4 sm:$0xff]  }
 0x2f1   :  { %3445 = vmatpush3.bf16.msra.mxu0 %v3444_v54  ;;  %v3995_v54 = vld [vmem:[%s5670_s3 + $0x7f4] ss:$24 sps:$4 sm:$0xff]  }
 0x2f2   :  { %3447 = vmatprep.subr.bf16.mxu0 %v3446_v60  ;;  %v3999_v60 = vld [vmem:[%s5670_s3 + $0x850] ss:$24 sps:$4 sm:$0xff]  }
 0x2f3   :  { %2507 = vmatpush1.bf16.msra.mxu1 %v3930_v51  ;;  %v3989_v51 = vld [vmem:[%s5670_s3 + $0x794] ss:$24 sps:$4 sm:$0xff]  }
 0x2f4   :  { %2508 = vmatprep.subr.bf16.mxu1 %v3935_v53  ;;  %v3990_v53 = vld [vmem:[%s5670_s3 + $0x7c0] ss:$24 sps:$4 sm:$0xff]  }
 0x2f5   :  { %3449 = vmatpush3.bf16.msra.mxu0 %v3448_v63  ;;  %v4007_v63 = vld [vmem:[%s5670_s3 + $0x8b4] ss:$24 sps:$4 sm:$0xff]  }
 0x2f6   :  { %3451 = vmatprep.subr.bf16.mxu0 %v3450_v6  ;;  %v745_v6 = vsub.s32 1, %v5451_v4 }
 0x2f7   :  { %2509 = vmatpush1.bf16.msra.mxu1 %v3933_v55  ;;  %v3993_v55 = vld [vmem:[%s5670_s3 + $0x7f0] ss:$24 sps:$4 sm:$0xff]  }
 0x2f8   :  { %2510 = vmatprep.subr.bf16.mxu1 %v3938_v59  ;;  %v4001_v59 = vld [vmem:[%s5670_s3 + $0x854] ss:$24 sps:$4 sm:$0xff]  }
 0x2f9   :  { %3453 = vmatpush3.bf16.msra.mxu0 %v3452_v1  ;;  %v746_v1 = vrot.slane %v5458_v7, %v745_v6  ;;  %v2647_v6 = vld [vmem:[%s5671_s5 + $0x1f8] sm:$0xff] }
 0x2fa   :  { %3455 = vmatprep.subr.bf16.mxu0 %v3454_v11 }
 0x2fb   :  { %2511 = vmatpush1.bf16.msra.mxu1 %v3936_v0  ;;  %v4005_v0 = vld [vmem:[%s5670_s3 + $0x8b0] ss:$24 sps:$4 sm:$0xff]  }
 0x2fc   :  { %2512 = vmatprep.subr.bf16.mxu1 %v3941_v2  ;;  %v4010_v2 = vld [vmem:[%s5670_s3 + $0x8e4] ss:$24 sps:$4 sm:$0xff]  }
 0x2fd   :  { %3457 = vmatpush3.bf16.msra.mxu0 %v3456_v15 }
 0x2fe   :  { %3459 = vmatprep.subr.bf16.mxu0 %v3458_v21  ;;  %v2616_v21 = vld [vmem:[%s5671_s5 + $0x100] sm:$0xff] }
 0x2ff   :  { %2513 = vmatpush1.bf16.msra.mxu1 %v3939_v14 }
 0x300   :  { %2514 = vmatprep.subr.bf16.mxu1 %v3944_v16 }
 0x303   :  { %2515 = vmatpush1.bf16.msra.mxu1 %v3942_v23 }
 0x304   :  { %2516 = vmatprep.subr.bf16.mxu1 %v3947_v10 }
 0x307   :  { %2517 = vmatpush1.bf16.msra.mxu1 %v3945_v22  ;;  %v2617_v22 = vld [vmem:[%s5671_s5 + $0x108] sm:$0xff] }
 0x308   :  { %2518 = vmatprep.subr.bf16.mxu1 %v3950_v57  ;;  %v2634_v57 = vld [vmem:[%s5671_s5 + $0x190] sm:$0xff] }
 0x30b   :  { %2519 = vmatpush1.bf16.msra.mxu1 %v3948_v24  ;;  %v2635_v24 = vld [vmem:[%s5671_s5 + $0x198] sm:$0xff] }
 0x30c   :  { %2520 = vmatprep.subr.bf16.mxu1 %v3953_v25  ;;  %v3460_v25 = vpack.c.bf16 %v2617_v22, %v2616_v21  ;;  %v2651_v21 = vld [vmem:[%s5671_s5 + $0x218] sm:$0xff] }
 0x30f   :  { %2521 = vmatpush1.bf16.msra.mxu1 %v3951_v26 }
 0x310   :  { %2522 = vmatprep.subr.bf16.mxu1 %v3956_v27  ;;  %v3462_v27 = vpack.c.bf16 %v2635_v24, %v2634_v57  ;;  %v2668_v57 = vld [vmem:[%s5671_s5 + $0x2a0] sm:$0xff]  ;;  %v2669_v24 = vld [vmem:[%s5671_s5 + $0x2a8] sm:$0xff] }
 0x313   :  { %2523 = vmatpush1.bf16.msra.mxu1 %v3954_v28  ;;  %v2618_v28 = vld [vmem:[%s5671_s5 + $0x110] sm:$0xff] }
 0x314   :  { %2524 = vmatprep.subr.bf16.mxu1 %v3959_v31  ;;  %v2619_v31 = vld [vmem:[%s5671_s5 + $0x118] sm:$0xff] }
 0x317   :  { %2525 = vmatpush1.bf16.msra.mxu1 %v3957_v32 }
 0x318   :  { %2526 = vmatprep.subr.bf16.mxu1 %v3962_v35  ;;  %v2636_v35 = vld [vmem:[%s5671_s5 + $0x1a0] sm:$0xff] }
 0x31b   :  { %2527 = vmatpush1.bf16.msra.mxu1 %v3960_v37  ;;  %v2637_v37 = vld [vmem:[%s5671_s5 + $0x1a8] sm:$0xff] }
 0x31c   :  { %2537 = vmatprep.subr.bf16.mxu1 %v3965_v38 }
 0x31e   :  { %2529 = vmatmul.mubr.bf16.vlgmr.msra.gmra.mrb[4].mxu1 %v4857_v34  ;;  %v3974_v34 = vld [vmem:[%s5670_s3 + $0x6a4] ss:$24 sps:$4 sm:$0xff]  }
 0x31f   :  { %2538 = vmatpush1.bf16.msra.mxu1 %v3963_v39  ;;  %2569 = vmatprep.mubr.bf16.mxu1 %v4862_v36  ;;  %v3972_v36 = vld [vmem:[%s5670_s3 + $0x6a0] ss:$24 sps:$4 sm:$0xff]   ;;  %v3464_v39 = vpack.c.bf16 %v2619_v31, %v2618_v28  ;;  %v2653_v28 = vld [vmem:[%s5671_s5 + $0x228] sm:$0xff]  ;;  %v2670_v31 = vld [vmem:[%s5671_s5 + $0x2b0] sm:$0xff] }
 0x320   :  { %2539 = vmatprep.subr.bf16.mxu1 %v3968_v40  ;;  %v3466_v40 = vpack.c.bf16 %v2637_v37, %v2636_v35 }
 0x323   :  { %2540 = vmatpush1.bf16.msra.mxu1 %v3966_v41  ;;  %v2620_v41 = vld [vmem:[%s5671_s5 + $0x120] sm:$0xff] }
 0x324   :  { %2541 = vmatprep.subr.bf16.mxu1 %v3971_v42  ;;  %v2621_v42 = vld [vmem:[%s5671_s5 + $0x128] sm:$0xff] }
 0x327   :  { %2542 = vmatpush1.bf16.msra.mxu1 %v3969_v44  ;;  %v2638_v44 = vld [vmem:[%s5671_s5 + $0x1b0] sm:$0xff] }
 0x328   :  { %2543 = vmatprep.subr.bf16.mxu1 %v3974_v34  ;;  %v2639_v34 = vld [vmem:[%s5671_s5 + $0x1b8] sm:$0xff] }
 0x32b   :  { %2544 = vmatpush1.bf16.msra.mxu1 %v3972_v36  ;;  %v3468_v36 = vpack.c.bf16 %v2621_v42, %v2620_v41  ;;  %v2672_v41 = vld [vmem:[%s5671_s5 + $0x2c0] sm:$0xff]  ;;  %v2673_v42 = vld [vmem:[%s5671_s5 + $0x2c8] sm:$0xff] }
 0x32c   :  { %2545 = vmatprep.subr.bf16.mxu1 %v3977_v45  ;;  %v3470_v45 = vpack.c.bf16 %v2639_v34, %v2638_v44  ;;  %v3506_v44 = vpack.c.bf16 %v2673_v42, %v2672_v41  ;;  %v2656_v34 = vld [vmem:[%s5671_s5 + $0x240] sm:$0xff] }
 0x32f   :  { %2546 = vmatpush1.bf16.msra.mxu1 %v3975_v30  ;;  %v2622_v30 = vld [vmem:[%s5671_s5 + $0x130] sm:$0xff] }
 0x330   :  { %2547 = vmatprep.subr.bf16.mxu1 %v3980_v46  ;;  %v2623_v46 = vld [vmem:[%s5671_s5 + $0x138] sm:$0xff] }
 0x333   :  { %2548 = vmatpush1.bf16.msra.mxu1 %v3978_v47  ;;  %v2640_v47 = vld [vmem:[%s5671_s5 + $0x1c0] sm:$0xff] }
 0x334   :  { %2549 = vmatprep.subr.bf16.mxu1 %v3983_v19  ;;  %v2641_v19 = vld [vmem:[%s5671_s5 + $0x1c8] sm:$0xff] }
 0x337   :  { %2550 = vmatpush1.bf16.msra.mxu1 %v3981_v48  ;;  %v749_v48 = vsub.s32 2, %v5451_v4 }
 0x338   :  { %2551 = vmatprep.subr.bf16.mxu1 %v3986_v49  ;;  %v3472_v49 = vpack.c.bf16 %v2623_v46, %v2622_v30  ;;  %v2674_v30 = vld [vmem:[%s5671_s5 + $0x2d0] sm:$0xff]  ;;  %v2675_v46 = vld [vmem:[%s5671_s5 + $0x2d8] sm:$0xff] }
 0x33b   :  { %2552 = vmatpush1.bf16.msra.mxu1 %v3984_v50  ;;  %v3474_v50 = vpack.c.bf16 %v2641_v19, %v2640_v47  ;;  %v3510_v47 = vpack.c.bf16 %v2675_v46, %v2674_v30  ;;  %v2658_v19 = vld [vmem:[%s5671_s5 + $0x250] sm:$0xff] }
 0x33c   :  { %2553 = vmatprep.subr.bf16.mxu1 %v3989_v51  ;;  %v2624_v51 = vld [vmem:[%s5671_s5 + $0x140] sm:$0xff] }
 0x33f   :  { %2554 = vmatpush1.bf16.msra.mxu1 %v3987_v20  ;;  %v2625_v20 = vld [vmem:[%s5671_s5 + $0x148] sm:$0xff] }
 0x340   :  { %2555 = vmatprep.subr.bf16.mxu1 %v3992_v52  ;;  %v2642_v52 = vld [vmem:[%s5671_s5 + $0x1d0] sm:$0xff] }
 0x343   :  { %2556 = vmatpush1.bf16.msra.mxu1 %v3990_v53  ;;  %v2643_v53 = vld [vmem:[%s5671_s5 + $0x1d8] sm:$0xff] }
 0x344   :  { %2557 = vmatprep.subr.bf16.mxu1 %v3995_v54  ;;  %v750_v54 = vrot.slane %v5458_v7, %v749_v48  ;;  %v2659_v48 = vld [vmem:[%s5671_s5 + $0x258] sm:$0xff] }
 0x347   :  { %2558 = vmatpush1.bf16.msra.mxu1 %v3993_v55  ;;  %v3476_v55 = vpack.c.bf16 %v2625_v20, %v2624_v51  ;;  %v2677_v51 = vld [vmem:[%s5671_s5 + $0x2e8] sm:$0xff]  ;;  %v2660_v20 = vld [vmem:[%s5671_s5 + $0x260] sm:$0xff] }
 0x348   :  { %2559 = vmatprep.subr.bf16.mxu1 %v3998_v56  ;;  %v3478_v56 = vpack.c.bf16 %v2643_v53, %v2642_v52  ;;  %v2661_v52 = vld [vmem:[%s5671_s5 + $0x268] sm:$0xff] }
 0x34b   :  { %2560 = vmatpush1.bf16.msra.mxu1 %v3996_v58  ;;  %v2626_v58 = vld [vmem:[%s5671_s5 + $0x150] sm:$0xff] }
 0x34c   :  { %2561 = vmatprep.subr.bf16.mxu1 %v4001_v59  ;;  %v2627_v59 = vld [vmem:[%s5671_s5 + $0x158] sm:$0xff] }
 0x34f   :  { %2562 = vmatpush1.bf16.msra.mxu1 %v3999_v60  ;;  %v2644_v60 = vld [vmem:[%s5671_s5 + $0x1e0] sm:$0xff] }
 0x350   :  { %2563 = vmatprep.subr.bf16.mxu1 %v4004_v61  ;;  %v2645_v61 = vld [vmem:[%s5671_s5 + $0x1e8] sm:$0xff] }
 0x353   :  { %2564 = vmatpush1.bf16.msra.mxu1 %v4002_v62 }
 0x354   :  { %2565 = vmatprep.subr.bf16.mxu1 %v4007_v63  ;;  %v3480_v63 = vpack.c.bf16 %v2627_v59, %v2626_v58  ;;  %v2662_v59 = vld [vmem:[%s5671_s5 + $0x270] sm:$0xff] }
 0x357   :  { %2566 = vmatpush1.bf16.msra.mxu1 %v4005_v0  ;;  %v3482_v0 = vpack.c.bf16 %v2645_v61, %v2644_v60  ;;  %v2663_v60 = vld [vmem:[%s5671_s5 + $0x278] sm:$0xff] }
 0x358   :  { %2567 = vmatprep.subr.bf16.mxu1 %v4010_v2  ;;  %v2628_v2 = vld [vmem:[%s5671_s5 + $0x160] sm:$0xff]  ;;  %v3520_v61 = vpack.c.bf16 %v2663_v60, %v2662_v59 }
 0x35b   :  { %2568 = vmatpush1.bf16.msra.mxu1 %v4008_v3  ;;  %v2629_v3 = vld [vmem:[%s5671_s5 + $0x168] sm:$0xff] }
 0x35e   :  { %2570 = vmatmul.mubr.bf16.vlgmr.msra.gmra.mrb[4].mxu1 %v5056_v43  ;;  %v754_v43 = vrot.slane %v5458_v7, %v753_v8  ;;  %v3484_v8 = vpack.c.bf16 %v2629_v3, %v2628_v2 }
 0x371   :  { %v2325_v11 = vpop.f32.mrb[0].mxu1 }
 0x372   :  { %v5464_v29 = vpop.f32.mrb[8].mxu0  ;;  %v2327_v12 = vpop.f32.mrb[1].mxu1  ;;  %v3522_v13 = vadd.f32 %v2325_v11, %v742_v9  ;;  %v3486_v9 = vpack.c.bf16 %v2647_v6, %v2646_v5  ;;  %v2664_v11 = vld [vmem:[%s5671_s5 + $0x280] sm:$0xff] }
 0x373   :  { %v3523_v14 = vadd.f32 %v2327_v12, %v746_v1  ;;  %v2450_v15 = vpop.f32.mrb[9].mxu0  ;;  %v2329_v16 = vpop.f32.mrb[2].mxu1  ;;  %v3524_v62 = vadd.f32 %v5464_v29, %v750_v54  ;;  %v2630_v1 = vld [vmem:[%s5671_s5 + $0x170] sm:$0xff]  ;;  %v2665_v29 = vld [vmem:[%s5671_s5 + $0x288] sm:$0xff] }
 0x374   :  { %v3525_v23 = vadd.f32 %v2450_v15, %v754_v43  ;;  %v2452_v17 = vpop.f32.mrb[10].mxu0  ;;  %v2330_v18 = vpop.f32.mrb[3].mxu1  ;;  %v2631_v43 = vld [vmem:[%s5671_s5 + $0x178] sm:$0xff]  ;;  %v2649_v15 = vld [vmem:[%s5671_s5 + $0x208] sm:$0xff]  ;;  %v2666_v16 = vld [vmem:[%s5671_s5 + $0x290] sm:$0xff] }
 0x375   :  { %v2453_v10 = vpop.f32.mrb[11].mxu0  ;;  %4013 = vtanh.f32 %v3523_v14  ;;  %v3488_v12 = vpack.c.bf16 %v2631_v43, %v2630_v1  ;;  %v2648_v14 = vld [vmem:[%s5671_s5 + $0x200] sm:$0xff]  ;;  %v2678_v54 = vld [vmem:[%s5671_s5 + $0x2f0] sm:$0xff] }
 0x376   :  { %4015 = vtanh.f32 %v3522_v13  ;;  %v3490_v13 = vpack.c.bf16 %v2665_v29, %v2664_v11  ;;  %v3492_v17 = vpack.c.bf16 %v2649_v15, %v2648_v14  ;;  %v2650_v10 = vld [vmem:[%s5671_s5 + $0x210] sm:$0xff] }
 0x377   :  { %4017 = vtanh.f32 %v3525_v23  ;;  %v2667_v23 = vld [vmem:[%s5671_s5 + $0x298] sm:$0xff] }
 0x378   :  { %4019 = vtanh.f32 %v3524_v62  ;;  %v3494_v18 = vpack.c.bf16 %v2667_v23, %v2666_v16  ;;  %v757_v62 = vsub.s32 4, %v5451_v4 }
 0x37f   :  { %v4014_v26 = vpop.eup %4013 }
 0x380   :  { %v4016_v32 = vpop.eup %4015  ;;  %2751 = vmatprep.mubr.f32.mxu0 %v4014_v26  ;;  %v3498_v26 = vpack.c.bf16 %v2669_v24, %v2668_v57 }
 0x381   :  { %v4018_v38 = vpop.eup %4017  ;;  %2752 = vmatmul.mubr.f32.vlgmr.msra.gmra.mrb[6].mxu0 %v4016_v32  ;;  %v2671_v32 = vld [vmem:[%s5671_s5 + $0x2b8] sm:$0xff] }
 0x382   :  { %3461 = vmatpush3.bf16.msra.mxu0 %v3460_v25  ;;  %2821 = vmatprep.mubr.f32.mxu0 %v4018_v38  ;;  %v4020_v22 = vpop.eup %4019  ;;  %v3496_v25 = vpack.c.bf16 %v2651_v21, %v2650_v10  ;;  %v3502_v37 = vpack.c.bf16 %v2671_v32, %v2670_v31  ;;  %v2654_v38 = vld [vmem:[%s5671_s5 + $0x230] sm:$0xff] }
 0x383   :  { %3463 = vmatprep.subr.bf16.mxu0 %v3462_v27  ;;  %v2652_v27 = vld [vmem:[%s5671_s5 + $0x220] sm:$0xff] }
 0x384   :  { %v3500_v35 = vpack.c.bf16 %v2653_v28, %v2652_v27 }
 0x386   :  { %3465 = vmatpush3.bf16.msra.mxu0 %v3464_v39  ;;  %v2655_v39 = vld [vmem:[%s5671_s5 + $0x238] sm:$0xff] }
 0x387   :  { %3467 = vmatprep.subr.bf16.mxu0 %v3466_v40  ;;  %v3504_v40 = vpack.c.bf16 %v2655_v39, %v2654_v38 }
 0x38a   :  { %3469 = vmatpush3.bf16.msra.mxu0 %v3468_v36  ;;  %v2657_v36 = vld [vmem:[%s5671_s5 + $0x248] sm:$0xff] }
 0x38b   :  { %3471 = vmatprep.subr.bf16.mxu0 %v3470_v45  ;;  %v3508_v45 = vpack.c.bf16 %v2657_v36, %v2656_v34 }
 0x38e   :  { %3473 = vmatpush3.bf16.msra.mxu0 %v3472_v49  ;;  %v2676_v49 = vld [vmem:[%s5671_s5 + $0x2e0] sm:$0xff] }
 0x38f   :  { %3475 = vmatprep.subr.bf16.mxu0 %v3474_v50  ;;  %v3512_v50 = vpack.c.bf16 %v2659_v48, %v2658_v19  ;;  %v3514_v53 = vpack.c.bf16 %v2677_v51, %v2676_v49 }
 0x392   :  { %3477 = vmatpush3.bf16.msra.mxu0 %v3476_v55  ;;  %v2679_v55 = vld [vmem:[%s5671_s5 + $0x2f8] sm:$0xff] }
 0x393   :  { %3479 = vmatprep.subr.bf16.mxu0 %v3478_v56  ;;  %v3516_v56 = vpack.c.bf16 %v2661_v52, %v2660_v20  ;;  %v3518_v58 = vpack.c.bf16 %v2679_v55, %v2678_v54 }
 0x396   :  { %3481 = vmatpush3.bf16.msra.mxu0 %v3480_v63  ;;  %v761_v63 = vsub.s32 5, %v5451_v4  ;;  %v3224_v4 = vld [vmem:[%s5673_s6] ss:$0 sm:$0xff] }
 0x397   :  { %3483 = vmatprep.subr.bf16.mxu0 %v3482_v0  ;;  %v758_v0 = vrot.slane %v5458_v7, %v757_v62 }
 0x398   :  { %v762_v2 = vrot.slane %v5458_v7, %v761_v63 }
 0x39a   :  { %3485 = vmatpush3.bf16.msra.mxu0 %v3484_v8 }
 0x39b   :  { %3487 = vmatprep.subr.bf16.mxu0 %v3486_v9 }
 0x39e   :  { %3489 = vmatpush3.bf16.msra.mxu0 %v3488_v12 }
 0x39f   :  { %3491 = vmatprep.subr.bf16.mxu0 %v3490_v13 }
 0x3a1   :  { %2822 = vmatmul.mubr.f32.vlgmr.msra.gmra.mrb[12].mxu0 %v4020_v22 }
 0x3a2   :  { %3493 = vmatpush3.bf16.msra.mxu0 %v3492_v17 }
 0x3a3   :  { %3495 = vmatprep.subr.bf16.mxu0 %v3494_v18 }
 0x3a6   :  { %3497 = vmatpush3.bf16.msra.mxu0 %v3496_v25 }
 0x3a7   :  { %3499 = vmatprep.subr.bf16.mxu0 %v3498_v26 }
 0x3aa   :  { %3501 = vmatpush3.bf16.msra.mxu0 %v3500_v35 }
 0x3ab   :  { %3503 = vmatprep.subr.bf16.mxu0 %v3502_v37 }
 0x3ae   :  { %3505 = vmatpush3.bf16.msra.mxu0 %v3504_v40 }
 0x3af   :  { %3507 = vmatprep.subr.bf16.mxu0 %v3506_v44 }
 0x3b2   :  { %3509 = vmatpush3.bf16.msra.mxu0 %v3508_v45 }
 0x3b3   :  { %3511 = vmatprep.subr.bf16.mxu0 %v3510_v47 }
 0x3b6   :  { %3513 = vmatpush3.bf16.msra.mxu0 %v3512_v50 }
 0x3b7   :  { %3515 = vmatprep.subr.bf16.mxu0 %v3514_v53 }
 0x3ba   :  { %3517 = vmatpush3.bf16.msra.mxu0 %v3516_v56 }
 0x3bb   :  { %3519 = vmatprep.subr.bf16.mxu0 %v3518_v58 }
 0x3be   :  { %3521 = vmatpush3.bf16.msra.mxu0 %v3520_v61 }
 0x431   :  { %v2571_v3 = vpop.f32.mrb[4].mxu1 }
 0x432   :  { %v3526_v5 = vadd.f32 %v2571_v3, %v758_v0  ;;  %v2573_v6 = vpop.f32.mrb[5].mxu1 }
 0x433   :  { %v3527_v8 = vadd.f32 %v2573_v6, %v762_v2  ;;  %v2575_v9 = vpop.f32.mrb[6].mxu1 }
 0x434   :  { %v2576_v1 = vpop.f32.mrb[7].mxu1 }
 0x435   :  { %4021 = vtanh.f32 %v3527_v8 }
 0x436   :  { %4023 = vtanh.f32 %v3526_v5 }
 0x43f   :  { %v4022_v43 = vpop.eup %4021 }
 0x440   :  { %v4024_v11 = vpop.eup %4023  ;;  %2891 = vmatprep.mubr.f32.mxu0 %v4022_v43 }
 0x441   :  { %2892 = vmatmul.mubr.f32.vlgmr.msra.gmra.mrb[14].mxu0 %v4024_v11 }
 0x454   :  { %v3257_v29 = vpop.f32.mrb[6].mxu0 }
 0x455   :  { %v3258_v12 = vpop.f32.mrb[7].mxu0 }
 0x456   :  { %v3259_v13 = vadd.f32 %v3258_v12, %v3257_v29 }
 0x458   :  { %v2754_v15 = vadd.f32 %v3259_v13, %v3224_v4 }
 0x474   :  { %v3292_v7 = vpop.f32.mrb[12].mxu0 }
 0x475   :  { %v3293_v14 = vpop.f32.mrb[13].mxu0 }
 0x476   :  { %v3294_v16 = vadd.f32 %v3293_v14, %v3292_v7 }
 0x478   :  { %v2824_v23 = vadd.f32 %v3294_v16, %v2754_v15 }
 0x514   :  { %v3327_v17 = vpop.f32.mrb[14].mxu0 }
 0x515   :  { %v3328_v18 = vpop.f32.mrb[15].mxu0 }
 0x516   :  { %v3329_v10 = vadd.f32 %v3328_v18, %v3327_v17 }
 0x518   :  { %v2894_v21 = vadd.f32 %v3329_v10, %v2824_v23 }
 0x51a   :  { %v2897_v22 = vmax.f32 %v2894_v21, 0.0 }
 0x51c   :  { %2899 = vrot.lane.b32.xlu0 %v2897_v22, %s4038_s1 }
 0x58e   :  { %v2900_v57 = vpop.permute.xlu0 %2899 }
 0x58f   :  { %v2902_v24 = vsub.f32 %v2897_v22, %v2900_v57 }
 0x591   :  { %v2903_v25 = vmul.f32 1.442695, %v2902_v24 }
 0x593   :  { %4025 = vpow2.f32 %v2903_v25 }
 0x59d   :  { %v4026_v26 = vpop.eup %4025 }
 0x59e   :  { %v2905_v27 = vadd.f32 1.0, %v4026_v26 }
 0x5a0   :  { %4027 = vrcp.f32 %v2905_v27 }
 0x5aa   :  { %v4028_v28 = vpop.eup %4027 }
 0x5ab   :  { %2919 = vperm.xlu0 %3578, %v4028_v28   ;;  %v2908_v31 = vsub.f32 1.0, %v4028_v28 }
 0x5ad   :  { %2913 = vperm.xlu1 %3577, %v2908_v31  }
 0x62a   :  { %v2920_v35 = vpop.permute.xlu0 %2919 }
 0x62c   :  { %v2914_v32 = vpop.permute.xlu1 %2913 }
 0x62d   :  { %v2916_v37 = vsel %vm2910_vm9, %v2914_v32, 0.0 }
 0x62e   :  { %v2922_v38 = vsel %vm2909_vm10, %v2920_v35, %v2916_v37 }
 0x62f   :  { %2923 = vst [vmem:[%s5674_s7] sm:$0xff] %v2922_v38 }

</bundles_post_ra>
